<compile_context>
chip_gen: v6e
topology: v6e:2x2x1
jax: 0.10.0
libtpu: 0.0.40
codegen_flags: <defaults>
</compile_context>

<pallas_src>
import jax
import jax.numpy as jnp
import numpy as np
from jax import lax
from jax.experimental import pallas as pl
from jax.experimental.pallas import tpu as pltpu


def _round_up(x, m):
    return (x + m - 1) // m * m


def _make_convblock_kernel(taps, c_slice, m_rows, dw, linear):
    """taps: list of static (weight_row, flat_row_offset, channel_offset)."""
    ntaps = len(taps)

    def kernel(x_ref, w_ref, bp_ref, o_ref):
        for t, (j, row0, cofs) in enumerate(taps):
            patch = x_ref[pl.ds(row0, m_rows), pl.ds(cofs, c_slice)]
            if dw:
                # Depthwise: per-channel MAC on the VPU, f32 accumulate.
                contrib = patch.astype(jnp.float32) * w_ref[pl.ds(j, 1), :]
            else:
                # Standard conv: bf16 MXU matmul, f32 accumulate.
                contrib = jnp.dot(patch, w_ref[j],
                                  preferred_element_type=jnp.float32)
            if t == 0:
                # Fold the BatchNorm shift into the first tap (the BN scale is
                # already folded into the weights) — no separate epilogue pass.
                y = contrib + bp_ref[pl.ds(0, 1), :]
            else:
                y = o_ref[...] + contrib
            if t == ntaps - 1 and not linear:
                # Fuse PReLU into the final store.
                y = jnp.where(y > 0.0, y, bp_ref[pl.ds(1, 1), :] * y)
            o_ref[...] = y

    return kernel


def conv_block_forward(x_nchw, weight, bn_gamma, bn_beta, bn_mean, bn_var,
                       prelu_alpha, *, stride, padding, dw=False, linear=False,
                       eps=1e-5):
    """Pallas implementation of ConvBlock.forward (bias-free conv, eval-mode BN)."""
    N, Cin, H, W = map(int, x_nchw.shape)
    Cout = int(weight.shape[0])
    kh, kw = int(weight.shape[2]), int(weight.shape[3])
    sh, sw = (stride, stride) if isinstance(stride, int) else (int(stride[0]), int(stride[1]))
    ph, pw = (padding, padding) if isinstance(padding, int) else (int(padding[0]), int(padding[1]))

    Ho = (H + 2 * ph - kh) // sh + 1
    Wo = (W + 2 * pw - kw) // sw + 1
    Cp = _round_up(Cout, 128)          # lane-dense output channels

    # ---- fold eval-mode BatchNorm into per-channel scale/shift ----
    inv_std = 1.0 / jnp.sqrt(bn_var.astype(jnp.float32) + eps)
    scale = bn_gamma.astype(jnp.float32) * inv_std
    shift = bn_beta.astype(jnp.float32) - bn_mean.astype(jnp.float32) * scale
    alpha = (jnp.ones((Cout,), jnp.float32) if linear
             else prelu_alpha.astype(jnp.float32))

    # ---- activations: NCHW -> NHWC, bf16 ----
    x = jnp.transpose(x_nchw, (0, 2, 3, 1)).astype(jnp.bfloat16)

    if dw:
        per_group = Cout // Cin
        if per_group != 1:
            x = x[..., jnp.arange(Cout) // per_group]      # grouped-conv channel map
        if Cp != Cout:
            x = jnp.pad(x, ((0, 0), (0, 0), (0, 0), (0, Cp - Cout)))
        Cx = Cp
        # depthwise weight (Cout,1,kh,kw) -> (kh*kw, Cp) f32, BN scale folded in
        w = jnp.transpose(weight.astype(jnp.float32)[:, 0], (1, 2, 0))   # (kh,kw,Cout)
        w = (w * scale[None, None, :]).reshape(kh * kw, Cout)
        w = jnp.pad(w, ((0, 0), (0, Cp - Cout))).astype(jnp.float32)
        c_slice = Cp
    else:
        Cx = Cin
        # dense weight (Cout,Cin,kh,kw) -> (kh*kw, Cin, Cp) bf16, BN scale folded in
        w = jnp.transpose(weight.astype(jnp.float32), (2, 3, 1, 0))      # (kh,kw,Cin,Cout)
        w = (w * scale[None, None, None, :]).reshape(kh * kw, Cin, Cout)
        w = jnp.pad(w, ((0, 0), (0, 0), (0, Cp - Cout))).astype(jnp.bfloat16)
        c_slice = Cin

    # ---- spatial zero-pad (rounded so space-to-depth divides evenly) ----
    Hp = _round_up(max(H + 2 * ph, (Ho - 1) * sh + kh), sh)
    Wp = _round_up(max(W + 2 * pw, (Wo - 1) * sw + kw), sw)
    x = jnp.pad(x, ((0, 0), (ph, Hp - H - ph), (pw, Wp - W - pw), (0, 0)))

    # ---- space-to-depth: strided taps become contiguous channel slices ----
    if sh != 1 or sw != 1:
        Hs, Ws = Hp // sh, Wp // sw
        x = x.reshape(N, Hs, sh, Ws, sw, Cx).transpose(0, 1, 3, 2, 4, 5)
        x = x.reshape(N, Hs, Ws, sh * sw * Cx)
    else:
        Hs, Ws = Hp, Wp
    Cs = int(x.shape[-1])
    Mf = Hs * Ws
    x = x.reshape(N, Mf, Cs)

    # flat output rows (Ws-strided; columns Wo..Ws-1 of each row are junk, sliced off)
    M_img = (Ho - 1) * Ws + Wo

    taps = []
    for i_kh in range(kh):
        for i_kw in range(kw):
            dh, ph_h = divmod(i_kh, sh)
            dwd, ph_w = divmod(i_kw, sw)
            taps.append((i_kh * kw + i_kw, dh * Ws + dwd, (ph_h * sw + ph_w) * Cx))

    bp = jnp.stack([jnp.pad(shift, (0, Cp - Cout)),
                    jnp.pad(alpha, (0, Cp - Cout), constant_values=1.0)], axis=0)

    kernel = _make_convblock_kernel(taps, c_slice, M_img, dw, linear)

    flops = 2 * N * Ho * Wo * kh * kw * (1 if dw else Cin) * Cout
    w_bytes = int(w.size) * int(w.dtype.itemsize)
    bytes_accessed = int(x.size) * 2 + w_bytes + N * M_img * Cp * 4

    # VMEM budget: double-buffered input & output blocks + weights + bn/prelu vector.
    x_blk_bytes = Mf * Cs * 2
    out_blk_bytes = M_img * Cp * 4
    vmem_need = 2 * (x_blk_bytes + out_blk_bytes) + w_bytes + 2 * Cp * 4
    vmem_limit = int(min(max(2 * vmem_need, 8 << 20), 48 << 20))

    if dw:
        w_spec = pl.BlockSpec((kh * kw, Cp), lambda n: (0, 0))
    else:
        w_spec = pl.BlockSpec((kh * kw, Cin, Cp), lambda n: (0, 0, 0))

    out_flat = pl.pallas_call(
        kernel,
        out_shape=jax.ShapeDtypeStruct((N, M_img, Cp), jnp.float32),
        grid_spec=pltpu.PrefetchScalarGridSpec(
            num_scalar_prefetch=0,
            grid=(N,),
            in_specs=[pl.BlockSpec((None, Mf, Cs), lambda n: (n, 0, 0)),
                      w_spec,
                      pl.BlockSpec((2, Cp), lambda n: (0, 0))],
            out_specs=pl.BlockSpec((None, M_img, Cp), lambda n: (n, 0, 0)),
        ),
        compiler_params=pltpu.CompilerParams(
            dimension_semantics=("parallel",),
            vmem_limit_bytes=vmem_limit),
        cost_estimate=pl.CostEstimate(flops=int(flops), transcendentals=0,
                                      bytes_accessed=int(bytes_accessed)),
    )(x, w, bp)

    # un-flatten: pad junk wrap columns, reshape, slice valid region, back to NCHW
    out = jnp.pad(out_flat, ((0, 0), (0, Ho * Ws - M_img), (0, 0)))
    out = out.reshape(N, Ho, Ws, Cp)[:, :, :Wo, :Cout]
    return jnp.transpose(out, (0, 3, 1, 2))


def conv_block_reference(x, weight, gamma, beta, mean, var, alpha, *,
                         stride, padding, dw, linear, eps=1e-5):
    """Pure-JAX reference matching PyTorch ConvBlock (eval-mode BN)."""
    groups = x.shape[1] if dw else 1
    sh, sw = (stride, stride) if isinstance(stride, int) else tuple(stride)
    ph, pw = (padding, padding) if isinstance(padding, int) else tuple(padding)
    y = lax.conv_general_dilated(
        x, weight, (sh, sw), [(ph, ph), (pw, pw)],
        dimension_numbers=("NCHW", "OIHW", "NCHW"),
        feature_group_count=groups)
    s = (gamma / jnp.sqrt(var + eps))[None, :, None, None]
    b = (beta - mean * gamma / jnp.sqrt(var + eps))[None, :, None, None]
    y = y * s + b
    if linear:
        return y
    return jnp.where(y > 0, y, alpha[None, :, None, None] * y)


if __name__ == "__main__":
    key = jax.random.PRNGKey(0)
    N, Cin, H, W = 2, 4, 16, 16
    Cout = 8

    keys = jax.random.split(key, 10)
    x = jax.random.normal(keys[0], (N, Cin, H, W), jnp.float32)

    w3_std = jax.random.normal(keys[1], (Cout, Cin, 3, 3), jnp.float32) * 0.1
    w1_std = jax.random.normal(keys[2], (Cout, Cin, 1, 1), jnp.float32) * 0.1
    w3_dw = jax.random.normal(keys[3], (Cout, 1, 3, 3), jnp.float32) * 0.1

    gamma = 1.0 + 0.1 * jax.random.normal(keys[4], (Cout,), jnp.float32)
    beta = 0.1 * jax.random.normal(keys[5], (Cout,), jnp.float32)
    run_mean = 0.1 * jax.random.normal(keys[6], (Cout,), jnp.float32)
    run_var = jnp.abs(jax.random.normal(keys[7], (Cout,), jnp.float32)) + 0.5
    prelu_a = jnp.full((Cout,), 0.25, jnp.float32)   # PyTorch PReLU default init

    # (weight, dw, stride, padding, linear)
    configs = [
        (w3_std, False, 1, 1, False),   # 3x3 conv + BN + PReLU
        (w3_std, False, 1, 1, True),    # 3x3 conv + BN (linear)
        (w1_std, False, 1, 0, False),   # 1x1 conv + BN + PReLU
        (w3_std, False, 2, 1, False),   # 3x3 stride-2 conv (space-to-depth path)
        (w3_dw,  True,  1, 1, False),   # depthwise 3x3 + BN + PReLU
        (w3_dw,  True,  2, 1, True),    # depthwise 3x3 stride-2 + BN (linear)
    ]

    ok = True
    worst = 0.0
    for weight, dw_flag, s, p, linear in configs:
        got = conv_block_forward(x, weight, gamma, beta, run_mean, run_var,
                                 prelu_a, stride=s, padding=p,
                                 dw=dw_flag, linear=linear)
        got = jax.block_until_ready(got)
        ref = conv_block_reference(x, weight, gamma, beta, run_mean, run_var,
                                   prelu_a, stride=s, padding=p,
                                   dw=dw_flag, linear=linear)
        worst = max(worst, float(jnp.max(jnp.abs(got - ref))))
        # bf16 inputs / bf16 weights with f32 accumulation -> ~1e-3 abs error
        if not np.allclose(np.asarray(got), np.asarray(ref), rtol=2e-2, atol=2e-2):
            ok = False

    if ok:
        print("KERNEL_OK")
    else:
        print(f"MISMATCH max_abs_diff={worst:.4e}")
</pallas_src>

<mosaic_0001>
module attributes {stable_mosaic.version = 11 : i64} {
  func.func @kernel(%arg0: i32, %arg1: memref<1x324x4xbf16, #tpu.memory_space<vmem>>, %arg2: memref<9x4x128xbf16, #tpu.memory_space<vmem>>, %arg3: memref<2x128xf32, #tpu.memory_space<vmem>>, %arg4: memref<1x286x128xf32, #tpu.memory_space<vmem>>) attributes {dimension_semantics = [#tpu.dimension_semantics<parallel>], iteration_bounds = array<i64: 2>, scalar_prefetch = 0 : i64, scratch_operands = 0 : i64, tpu.core_type = #tpu.core_type<tc>, window_params = [{transform_indices = @transform_0, window_bounds = array<i64: 1, 324, 4>}, {pipeline_mode = #tpu.pipeline_mode<synchronous>, transform_indices = @transform_1, window_bounds = array<i64: 9, 4, 128>}, {pipeline_mode = #tpu.pipeline_mode<synchronous>, transform_indices = @transform_2, window_bounds = array<i64: 2, 128>}, {transform_indices = @transform_3, window_bounds = array<i64: 1, 286, 128>}]} {
    %c0 = arith.constant 0 : index
    %c0_0 = arith.constant 0 : index
    %c0_1 = arith.constant 0 : index
    %0 = vector.load %arg1[%c0, %c0_0, %c0_1] : memref<1x324x4xbf16, #tpu.memory_space<vmem>>, vector<1x286x4xbf16>
    %1 = vector.shape_cast %0 : vector<1x286x4xbf16> to vector<286x4xbf16>
    %c0_2 = arith.constant 0 : index
    %c0_3 = arith.constant 0 : index
    %c0_4 = arith.constant 0 : index
    %2 = vector.load %arg2[%c0_2, %c0_3, %c0_4] : memref<9x4x128xbf16, #tpu.memory_space<vmem>>, vector<1x4x128xbf16>
    %3 = vector.shape_cast %2 : vector<1x4x128xbf16> to vector<4x128xbf16>
    %cst = arith.constant dense<0.000000e+00> : vector<286x128xf32>
    %4 = tpu.matmul %1, %3, %cst {dimension_numbers = #tpu.dot_dimension_numbers<[1], [0], [0], [1], [0, 0, 1, 1], [], []>} : vector<286x4xbf16>, vector<4x128xbf16>, vector<286x128xf32> -> vector<286x128xf32>
    %c0_5 = arith.constant 0 : index
    %c0_6 = arith.constant 0 : index
    %5 = vector.load %arg3[%c0_5, %c0_6] : memref<2x128xf32, #tpu.memory_space<vmem>>, vector<1x128xf32>
    %6 = vector.broadcast %5 : vector<1x128xf32> to vector<286x128xf32>
    %7 = arith.addf %4, %6 : vector<286x128xf32>
    %c0_7 = arith.constant 0 : index
    %c0_8 = arith.constant 0 : index
    %c0_9 = arith.constant 0 : index
    %8 = vector.load %arg4[%c0_7, %c0_8, %c0_9] : memref<1x286x128xf32, #tpu.memory_space<vmem>>, vector<1x286x128xf32>
    %9 = vector.shape_cast %8 : vector<1x286x128xf32> to vector<286x128xf32>
    %10 = vector.shape_cast %7 : vector<286x128xf32> to vector<1x286x128xf32>
    tpu.vector_store %arg4[%c0_7, %c0_8, %c0_9], %10 {strides = array<i32>} : memref<1x286x128xf32, #tpu.memory_space<vmem>>, vector<1x286x128xf32>,
    %c0_10 = arith.constant 0 : index
    %c1 = arith.constant 1 : index
    %c0_11 = arith.constant 0 : index
    %11 = vector.load %arg1[%c0_10, %c1, %c0_11] : memref<1x324x4xbf16, #tpu.memory_space<vmem>>, vector<1x286x4xbf16>
    %12 = vector.shape_cast %11 : vector<1x286x4xbf16> to vector<286x4xbf16>
    %c1_12 = arith.constant 1 : index
    %c0_13 = arith.constant 0 : index
    %c0_14 = arith.constant 0 : index
    %13 = vector.load %arg2[%c1_12, %c0_13, %c0_14] : memref<9x4x128xbf16, #tpu.memory_space<vmem>>, vector<1x4x128xbf16>
    %14 = vector.shape_cast %13 : vector<1x4x128xbf16> to vector<4x128xbf16>
    %cst_15 = arith.constant dense<0.000000e+00> : vector<286x128xf32>
    %15 = tpu.matmul %12, %14, %cst_15 {dimension_numbers = #tpu.dot_dimension_numbers<[1], [0], [0], [1], [0, 0, 1, 1], [], []>} : vector<286x4xbf16>, vector<4x128xbf16>, vector<286x128xf32> -> vector<286x128xf32>
    %c0_16 = arith.constant 0 : index
    %c0_17 = arith.constant 0 : index
    %c0_18 = arith.constant 0 : index
    %16 = vector.load %arg4[%c0_16, %c0_17, %c0_18] : memref<1x286x128xf32, #tpu.memory_space<vmem>>, vector<1x286x128xf32>
    %17 = vector.shape_cast %16 : vector<1x286x128xf32> to vector<286x128xf32>
    %18 = arith.addf %17, %15 : vector<286x128xf32>
    %c0_19 = arith.constant 0 : index
    %c0_20 = arith.constant 0 : index
    %c0_21 = arith.constant 0 : index
    %19 = vector.load %arg4[%c0_19, %c0_20, %c0_21] : memref<1x286x128xf32, #tpu.memory_space<vmem>>, vector<1x286x128xf32>
    %20 = vector.shape_cast %19 : vector<1x286x128xf32> to vector<286x128xf32>
    %21 = vector.shape_cast %18 : vector<286x128xf32> to vector<1x286x128xf32>
    tpu.vector_store %arg4[%c0_19, %c0_20, %c0_21], %21 {strides = array<i32>} : memref<1x286x128xf32, #tpu.memory_space<vmem>>, vector<1x286x128xf32>,
    %c0_22 = arith.constant 0 : index
    %c2 = arith.constant 2 : index
    %c0_23 = arith.constant 0 : index
    %22 = vector.load %arg1[%c0_22, %c2, %c0_23] : memref<1x324x4xbf16, #tpu.memory_space<vmem>>, vector<1x286x4xbf16>
    %23 = vector.shape_cast %22 : vector<1x286x4xbf16> to vector<286x4xbf16>
    %c2_24 = arith.constant 2 : index
    %c0_25 = arith.constant 0 : index
    %c0_26 = arith.constant 0 : index
    %24 = vector.load %arg2[%c2_24, %c0_25, %c0_26] : memref<9x4x128xbf16, #tpu.memory_space<vmem>>, vector<1x4x128xbf16>
    %25 = vector.shape_cast %24 : vector<1x4x128xbf16> to vector<4x128xbf16>
    %cst_27 = arith.constant dense<0.000000e+00> : vector<286x128xf32>
    %26 = tpu.matmul %23, %25, %cst_27 {dimension_numbers = #tpu.dot_dimension_numbers<[1], [0], [0], [1], [0, 0, 1, 1], [], []>} : vector<286x4xbf16>, vector<4x128xbf16>, vector<286x128xf32> -> vector<286x128xf32>
    %c0_28 = arith.constant 0 : index
    %c0_29 = arith.constant 0 : index
    %c0_30 = arith.constant 0 : index
    %27 = vector.load %arg4[%c0_28, %c0_29, %c0_30] : memref<1x286x128xf32, #tpu.memory_space<vmem>>, vector<1x286x128xf32>
    %28 = vector.shape_cast %27 : vector<1x286x128xf32> to vector<286x128xf32>
    %29 = arith.addf %28, %26 : vector<286x128xf32>
    %c0_31 = arith.constant 0 : index
    %c0_32 = arith.constant 0 : index
    %c0_33 = arith.constant 0 : index
    %30 = vector.load %arg4[%c0_31, %c0_32, %c0_33] : memref<1x286x128xf32, #tpu.memory_space<vmem>>, vector<1x286x128xf32>
    %31 = vector.shape_cast %30 : vector<1x286x128xf32> to vector<286x128xf32>
    %32 = vector.shape_cast %29 : vector<286x128xf32> to vector<1x286x128xf32>
    tpu.vector_store %arg4[%c0_31, %c0_32, %c0_33], %32 {strides = array<i32>} : memref<1x286x128xf32, #tpu.memory_space<vmem>>, vector<1x286x128xf32>,
    %c0_34 = arith.constant 0 : index
    %c18 = arith.constant 18 : index
    %c0_35 = arith.constant 0 : index
    %33 = vector.load %arg1[%c0_34, %c18, %c0_35] : memref<1x324x4xbf16, #tpu.memory_space<vmem>>, vector<1x286x4xbf16>
    %34 = vector.shape_cast %33 : vector<1x286x4xbf16> to vector<286x4xbf16>
    %c3 = arith.constant 3 : index
    %c0_36 = arith.constant 0 : index
    %c0_37 = arith.constant 0 : index
    %35 = vector.load %arg2[%c3, %c0_36, %c0_37] : memref<9x4x128xbf16, #tpu.memory_space<vmem>>, vector<1x4x128xbf16>
    %36 = vector.shape_cast %35 : vector<1x4x128xbf16> to vector<4x128xbf16>
    %cst_38 = arith.constant dense<0.000000e+00> : vector<286x128xf32>
    %37 = tpu.matmul %34, %36, %cst_38 {dimension_numbers = #tpu.dot_dimension_numbers<[1], [0], [0], [1], [0, 0, 1, 1], [], []>} : vector<286x4xbf16>, vector<4x128xbf16>, vector<286x128xf32> -> vector<286x128xf32>
    %c0_39 = arith.constant 0 : index
    %c0_40 = arith.constant 0 : index
    %c0_41 = arith.constant 0 : index
    %38 = vector.load %arg4[%c0_39, %c0_40, %c0_41] : memref<1x286x128xf32, #tpu.memory_space<vmem>>, vector<1x286x128xf32>
    %39 = vector.shape_cast %38 : vector<1x286x128xf32> to vector<286x128xf32>
    %40 = arith.addf %39, %37 : vector<286x128xf32>
    %c0_42 = arith.constant 0 : index
    %c0_43 = arith.constant 0 : index
    %c0_44 = arith.constant 0 : index
    %41 = vector.load %arg4[%c0_42, %c0_43, %c0_44] : memref<1x286x128xf32, #tpu.memory_space<vmem>>, vector<1x286x128xf32>
    %42 = vector.shape_cast %41 : vector<1x286x128xf32> to vector<286x128xf32>
    %43 = vector.shape_cast %40 : vector<286x128xf32> to vector<1x286x128xf32>
    tpu.vector_store %arg4[%c0_42, %c0_43, %c0_44], %43 {strides = array<i32>} : memref<1x286x128xf32, #tpu.memory_space<vmem>>, vector<1x286x128xf32>,
    %c0_45 = arith.constant 0 : index
    %c19 = arith.constant 19 : index
    %c0_46 = arith.constant 0 : index
    %44 = vector.load %arg1[%c0_45, %c19, %c0_46] : memref<1x324x4xbf16, #tpu.memory_space<vmem>>, vector<1x286x4xbf16>
    %45 = vector.shape_cast %44 : vector<1x286x4xbf16> to vector<286x4xbf16>
    %c4 = arith.constant 4 : index
    %c0_47 = arith.constant 0 : index
    %c0_48 = arith.constant 0 : index
    %46 = vector.load %arg2[%c4, %c0_47, %c0_48] : memref<9x4x128xbf16, #tpu.memory_space<vmem>>, vector<1x4x128xbf16>
    %47 = vector.shape_cast %46 : vector<1x4x128xbf16> to vector<4x128xbf16>
    %cst_49 = arith.constant dense<0.000000e+00> : vector<286x128xf32>
    %48 = tpu.matmul %45, %47, %cst_49 {dimension_numbers = #tpu.dot_dimension_numbers<[1], [0], [0], [1], [0, 0, 1, 1], [], []>} : vector<286x4xbf16>, vector<4x128xbf16>, vector<286x128xf32> -> vector<286x128xf32>
    %c0_50 = arith.constant 0 : index
    %c0_51 = arith.constant 0 : index
    %c0_52 = arith.constant 0 : index
    %49 = vector.load %arg4[%c0_50, %c0_51, %c0_52] : memref<1x286x128xf32, #tpu.memory_space<vmem>>, vector<1x286x128xf32>
    %50 = vector.shape_cast %49 : vector<1x286x128xf32> to vector<286x128xf32>
    %51 = arith.addf %50, %48 : vector<286x128xf32>
    %c0_53 = arith.constant 0 : index
    %c0_54 = arith.constant 0 : index
    %c0_55 = arith.constant 0 : index
    %52 = vector.load %arg4[%c0_53, %c0_54, %c0_55] : memref<1x286x128xf32, #tpu.memory_space<vmem>>, vector<1x286x128xf32>
    %53 = vector.shape_cast %52 : vector<1x286x128xf32> to vector<286x128xf32>
    %54 = vector.shape_cast %51 : vector<286x128xf32> to vector<1x286x128xf32>
    tpu.vector_store %arg4[%c0_53, %c0_54, %c0_55], %54 {strides = array<i32>} : memref<1x286x128xf32, #tpu.memory_space<vmem>>, vector<1x286x128xf32>,
    %c0_56 = arith.constant 0 : index
    %c20 = arith.constant 20 : index
    %c0_57 = arith.constant 0 : index
    %55 = vector.load %arg1[%c0_56, %c20, %c0_57] : memref<1x324x4xbf16, #tpu.memory_space<vmem>>, vector<1x286x4xbf16>
    %56 = vector.shape_cast %55 : vector<1x286x4xbf16> to vector<286x4xbf16>
    %c5 = arith.constant 5 : index
    %c0_58 = arith.constant 0 : index
    %c0_59 = arith.constant 0 : index
    %57 = vector.load %arg2[%c5, %c0_58, %c0_59] : memref<9x4x128xbf16, #tpu.memory_space<vmem>>, vector<1x4x128xbf16>
    %58 = vector.shape_cast %57 : vector<1x4x128xbf16> to vector<4x128xbf16>
    %cst_60 = arith.constant dense<0.000000e+00> : vector<286x128xf32>
    %59 = tpu.matmul %56, %58, %cst_60 {dimension_numbers = #tpu.dot_dimension_numbers<[1], [0], [0], [1], [0, 0, 1, 1], [], []>} : vector<286x4xbf16>, vector<4x128xbf16>, vector<286x128xf32> -> vector<286x128xf32>
    %c0_61 = arith.constant 0 : index
    %c0_62 = arith.constant 0 : index
    %c0_63 = arith.constant 0 : index
    %60 = vector.load %arg4[%c0_61, %c0_62, %c0_63] : memref<1x286x128xf32, #tpu.memory_space<vmem>>, vector<1x286x128xf32>
    %61 = vector.shape_cast %60 : vector<1x286x128xf32> to vector<286x128xf32>
    %62 = arith.addf %61, %59 : vector<286x128xf32>
    %c0_64 = arith.constant 0 : index
    %c0_65 = arith.constant 0 : index
    %c0_66 = arith.constant 0 : index
    %63 = vector.load %arg4[%c0_64, %c0_65, %c0_66] : memref<1x286x128xf32, #tpu.memory_space<vmem>>, vector<1x286x128xf32>
    %64 = vector.shape_cast %63 : vector<1x286x128xf32> to vector<286x128xf32>
    %65 = vector.shape_cast %62 : vector<286x128xf32> to vector<1x286x128xf32>
    tpu.vector_store %arg4[%c0_64, %c0_65, %c0_66], %65 {strides = array<i32>} : memref<1x286x128xf32, #tpu.memory_space<vmem>>, vector<1x286x128xf32>,
    %c0_67 = arith.constant 0 : index
    %c36 = arith.constant 36 : index
    %c0_68 = arith.constant 0 : index
    %66 = vector.load %arg1[%c0_67, %c36, %c0_68] : memref<1x324x4xbf16, #tpu.memory_space<vmem>>, vector<1x286x4xbf16>
    %67 = vector.shape_cast %66 : vector<1x286x4xbf16> to vector<286x4xbf16>
    %c6 = arith.constant 6 : index
    %c0_69 = arith.constant 0 : index
    %c0_70 = arith.constant 0 : index
    %68 = vector.load %arg2[%c6, %c0_69, %c0_70] : memref<9x4x128xbf16, #tpu.memory_space<vmem>>, vector<1x4x128xbf16>
    %69 = vector.shape_cast %68 : vector<1x4x128xbf16> to vector<4x128xbf16>
    %cst_71 = arith.constant dense<0.000000e+00> : vector<286x128xf32>
    %70 = tpu.matmul %67, %69, %cst_71 {dimension_numbers = #tpu.dot_dimension_numbers<[1], [0], [0], [1], [0, 0, 1, 1], [], []>} : vector<286x4xbf16>, vector<4x128xbf16>, vector<286x128xf32> -> vector<286x128xf32>
    %c0_72 = arith.constant 0 : index
    %c0_73 = arith.constant 0 : index
    %c0_74 = arith.constant 0 : index
    %71 = vector.load %arg4[%c0_72, %c0_73, %c0_74] : memref<1x286x128xf32, #tpu.memory_space<vmem>>, vector<1x286x128xf32>
    %72 = vector.shape_cast %71 : vector<1x286x128xf32> to vector<286x128xf32>
    %73 = arith.addf %72, %70 : vector<286x128xf32>
    %c0_75 = arith.constant 0 : index
    %c0_76 = arith.constant 0 : index
    %c0_77 = arith.constant 0 : index
    %74 = vector.load %arg4[%c0_75, %c0_76, %c0_77] : memref<1x286x128xf32, #tpu.memory_space<vmem>>, vector<1x286x128xf32>
    %75 = vector.shape_cast %74 : vector<1x286x128xf32> to vector<286x128xf32>
    %76 = vector.shape_cast %73 : vector<286x128xf32> to vector<1x286x128xf32>
    tpu.vector_store %arg4[%c0_75, %c0_76, %c0_77], %76 {strides = array<i32>} : memref<1x286x128xf32, #tpu.memory_space<vmem>>, vector<1x286x128xf32>,
    %c0_78 = arith.constant 0 : index
    %c37 = arith.constant 37 : index
    %c0_79 = arith.constant 0 : index
    %77 = vector.load %arg1[%c0_78, %c37, %c0_79] : memref<1x324x4xbf16, #tpu.memory_space<vmem>>, vector<1x286x4xbf16>
    %78 = vector.shape_cast %77 : vector<1x286x4xbf16> to vector<286x4xbf16>
    %c7 = arith.constant 7 : index
    %c0_80 = arith.constant 0 : index
    %c0_81 = arith.constant 0 : index
    %79 = vector.load %arg2[%c7, %c0_80, %c0_81] : memref<9x4x128xbf16, #tpu.memory_space<vmem>>, vector<1x4x128xbf16>
    %80 = vector.shape_cast %79 : vector<1x4x128xbf16> to vector<4x128xbf16>
    %cst_82 = arith.constant dense<0.000000e+00> : vector<286x128xf32>
    %81 = tpu.matmul %78, %80, %cst_82 {dimension_numbers = #tpu.dot_dimension_numbers<[1], [0], [0], [1], [0, 0, 1, 1], [], []>} : vector<286x4xbf16>, vector<4x128xbf16>, vector<286x128xf32> -> vector<286x128xf32>
    %c0_83 = arith.constant 0 : index
    %c0_84 = arith.constant 0 : index
    %c0_85 = arith.constant 0 : index
    %82 = vector.load %arg4[%c0_83, %c0_84, %c0_85] : memref<1x286x128xf32, #tpu.memory_space<vmem>>, vector<1x286x128xf32>
    %83 = vector.shape_cast %82 : vector<1x286x128xf32> to vector<286x128xf32>
    %84 = arith.addf %83, %81 : vector<286x128xf32>
    %c0_86 = arith.constant 0 : index
    %c0_87 = arith.constant 0 : index
    %c0_88 = arith.constant 0 : index
    %85 = vector.load %arg4[%c0_86, %c0_87, %c0_88] : memref<1x286x128xf32, #tpu.memory_space<vmem>>, vector<1x286x128xf32>
    %86 = vector.shape_cast %85 : vector<1x286x128xf32> to vector<286x128xf32>
    %87 = vector.shape_cast %84 : vector<286x128xf32> to vector<1x286x128xf32>
    tpu.vector_store %arg4[%c0_86, %c0_87, %c0_88], %87 {strides = array<i32>} : memref<1x286x128xf32, #tpu.memory_space<vmem>>, vector<1x286x128xf32>,
    %c0_89 = arith.constant 0 : index
    %c38 = arith.constant 38 : index
    %c0_90 = arith.constant 0 : index
    %88 = vector.load %arg1[%c0_89, %c38, %c0_90] : memref<1x324x4xbf16, #tpu.memory_space<vmem>>, vector<1x286x4xbf16>
    %89 = vector.shape_cast %88 : vector<1x286x4xbf16> to vector<286x4xbf16>
    %c8 = arith.constant 8 : index
    %c0_91 = arith.constant 0 : index
    %c0_92 = arith.constant 0 : index
    %90 = vector.load %arg2[%c8, %c0_91, %c0_92] : memref<9x4x128xbf16, #tpu.memory_space<vmem>>, vector<1x4x128xbf16>
    %91 = vector.shape_cast %90 : vector<1x4x128xbf16> to vector<4x128xbf16>
    %cst_93 = arith.constant dense<0.000000e+00> : vector<286x128xf32>
    %92 = tpu.matmul %89, %91, %cst_93 {dimension_numbers = #tpu.dot_dimension_numbers<[1], [0], [0], [1], [0, 0, 1, 1], [], []>} : vector<286x4xbf16>, vector<4x128xbf16>, vector<286x128xf32> -> vector<286x128xf32>
    %c0_94 = arith.constant 0 : index
    %c0_95 = arith.constant 0 : index
    %c0_96 = arith.constant 0 : index
    %93 = vector.load %arg4[%c0_94, %c0_95, %c0_96] : memref<1x286x128xf32, #tpu.memory_space<vmem>>, vector<1x286x128xf32>
    %94 = vector.shape_cast %93 : vector<1x286x128xf32> to vector<286x128xf32>
    %95 = arith.addf %94, %92 : vector<286x128xf32>
    %cst_97 = arith.constant 0.000000e+00 : f32
    %96 = vector.broadcast %cst_97 : f32 to vector<286x128xf32>
    %97 = arith.cmpf ogt, %95, %96 : vector<286x128xf32>
    %c1_98 = arith.constant 1 : index
    %c0_99 = arith.constant 0 : index
    %98 = vector.load %arg3[%c1_98, %c0_99] : memref<2x128xf32, #tpu.memory_space<vmem>>, vector<1x128xf32>
    %99 = vector.broadcast %98 : vector<1x128xf32> to vector<286x128xf32>
    %100 = arith.mulf %99, %95 : vector<286x128xf32>
    %101 = arith.select %97, %95, %100 : vector<286x128xi1>, vector<286x128xf32>
    %c0_100 = arith.constant 0 : index
    %c0_101 = arith.constant 0 : index
    %c0_102 = arith.constant 0 : index
    %102 = vector.load %arg4[%c0_100, %c0_101, %c0_102] : memref<1x286x128xf32, #tpu.memory_space<vmem>>, vector<1x286x128xf32>
    %103 = vector.shape_cast %102 : vector<1x286x128xf32> to vector<286x128xf32>
    %104 = vector.shape_cast %101 : vector<286x128xf32> to vector<1x286x128xf32>
    tpu.vector_store %arg4[%c0_100, %c0_101, %c0_102], %104 {strides = array<i32>} : memref<1x286x128xf32, #tpu.memory_space<vmem>>, vector<1x286x128xf32>,
    return
  }
  func.func @transform_0(%arg0: i32) -> (i32, i32, i32) {
    %c0_i32 = arith.constant 0 : i32
    %c0_i32_0 = arith.constant 0 : i32
    %c0_i32_1 = arith.constant 0 : i32
    return %arg0, %c0_i32, %c0_i32_0 : i32, i32, i32
  }
  func.func @transform_1(%arg0: i32) -> (i32, i32, i32) {
    %c0_i32 = arith.constant 0 : i32
    %c0_i32_0 = arith.constant 0 : i32
    %c0_i32_1 = arith.constant 0 : i32
    %c0_i32_2 = arith.constant 0 : i32
    return %c0_i32, %c0_i32_0, %c0_i32_1 : i32, i32, i32
  }
  func.func @transform_2(%arg0: i32) -> (i32, i32) {
    %c0_i32 = arith.constant 0 : i32
    %c0_i32_0 = arith.constant 0 : i32
    %c0_i32_1 = arith.constant 0 : i32
    return %c0_i32, %c0_i32_0 : i32, i32
  }
  func.func @transform_3(%arg0: i32) -> (i32, i32, i32) {
    %c0_i32 = arith.constant 0 : i32
    %c0_i32_0 = arith.constant 0 : i32
    %c0_i32_1 = arith.constant 0 : i32
    return %arg0, %c0_i32, %c0_i32_0 : i32, i32, i32
  }
}

</mosaic_0001>

<bundles_post_ra>
// kernel: tpu_custom_call.1
= control target key start
LH: loop header
LB: loop body
LE: loop exit
PB: predicated region body
PF: predicated region fallthrough
CT: control target
= control target key end

     0   :  { %s6268_s12 = smov 0   ;;  %s7445_s0 = inlined_call_operand.vmem [shape: bf16[2,324,4], index: 0, kind: input, shape index: {}]   ;;  %s7446_s1 = inlined_call_operand.vmem [shape: bf16[9,4,128], index: 1, kind: input, shape index: {}]   ;;  %s7447_s2 = inlined_call_operand.vmem [shape: f32[2,128], index: 2, kind: input, shape index: {}]   ;;  %s7448_s3 = inlined_call_operand.vmem [shape: f32[2,286,128], index: 3, kind: output, shape index: {}]  }
   0x1 LB: > { %s5190_s13 = sadd.s32 4294967295, %s6246_s12   ;;  %p5194_p0 = scmp.ge.s32.totalorder %s6246_s12, 1  ;;  %s6246_s12 = sphi %s6268_s12, %s13_s12  }
   0x2   : > { %p137_p1 = scmp.lt.s32.totalorder %s6246_s12, 3 }
   0x4   : > { %p138_p2 = pnand %p5194_p0, %p137_p1 }
   0x5   : > { %p161_p3 = scmp.lt.s32.totalorder (!%p138_p2), %s5190_s13, 1 }
   0x6   : > { %141 = sbr.rel (%p138_p2) target bundleno = 543 (0x21f), region = 32 }
   0xb   : > { %v208_v0 = vld [vmem:[%s7446_s1] sm:$0x3]  ;;  %vm359_vm0 = vcmask 1041408   ;;  %v5234_v2 = vld [vmem:[%s7446_s1 + $0x2] sm:$0x3]  ;;  %s7450_s13 = smov (!%p161_p3, %s5190_s13), 1 }
   0xc   : > { %6054 = vmatprep.subr.msk.bf16.mxu1 %vm359_vm0, %v208_v0  ;;  %6053 = vmatprep.subr.msk.bf16.mxu0 %vm359_vm0, %v208_v0  ;;  %v361_v1 = vsel %vm359_vm0, %v208_v0, 0  ;;  %v5271_v3 = vld [vmem:[%s7446_s1 + $0x4] sm:$0x3]  ;;  %s6063_s20 = smul.u32 164, %s7450_s13  ;;  %vm304_vm1 = vcmask 31744   ;;  %v903_v10 = vsel %vm359_vm0, %v5234_v2, 0 }
   0xd   : > { %6052 = vmatpush3.bf16.msra.mxu1 %v361_v1  ;;  %5710 = vmatpush3.bf16.msra.mxu0 %v361_v1  ;;  %v1409_v7 = vsel %vm359_vm0, %v5271_v3, 0  ;;  %v6306_v8 = vld [vmem:[%s7446_s1 + $0x6] sm:$0x3]  ;;  %v6314_v11 = vld [vmem:[%s7446_s1 + $0x8] sm:$0x3]  ;;  %vm1318_vm3 = vcmask 1046528  }
   0xe   : > { %6055 = vmatprep.subr.msk.bf16.mxu1 %vm359_vm0, %v5234_v2  ;;  %6056 = vmatprep.subr.msk.bf16.mxu0 %vm359_vm0, %v5271_v3  ;;  %s6296_s23 = scalar_lea.vmem %s7445_s0, %s6063_s20  ;;  %vm704_vm2 = vsmask.f32 7424  ;;  %v6366_v57 = vld [vmem:[%s7446_s1 + $0xa] sm:$0x3]  ;;  %v1914_v58 = vsel %vm359_vm0, %v6306_v8, 0  ;;  %vm2974_vm5 = vcmask 1045504  }
   0xf   : > { %v6073_v4 = vld [vmem:[%s6296_s23] sm:$0xff]   ;;  %v6074_v5 = vld [vmem:[%s6296_s23 + $0x50] sm:$0xff]   ;;  %v6075_v6 = vld [vmem:[%s6296_s23 + $0x8] sm:$0xff]   ;;  %vm2333_vm4 = vsmask.f32 6400  ;;  %s6064_s11 = smul.u32 288, %s7450_s13 }
  0x10   : > { %5711 = vmatprep.mubr.msk.bf16.mxu0 %vm304_vm1, %v6073_v4  ;;  %5731 = vmatprep.mubr.msk.bf16.mxu1 %vm304_vm1, %v6074_v5  ;;  %v6076_v9 = vld [vmem:[%s6296_s23 + $0x58] sm:$0xff]   ;;  %v6077_v12 = vld [vmem:[%s6296_s23 + $0x10] sm:$0xff]   ;;  %v6078_v13 = vld [vmem:[%s6296_s23 + $0x60] sm:$0xff]   ;;  %vm3997_vm6 = vsmask.f32 5376  ;;  %vm4642_vm7 = vcmask 1044480  }
  0x11   : > { %5712 = vmatmul.mubr.msk.bf16.vlgmr.msra.gmra.mxu0 %vm304_vm1, %v6075_v6  ;;  %5732 = vmatmul.mubr.msk.bf16.vlgmr.msra.gmra.mxu1 %vm304_vm1, %v6076_v9  ;;  %v6079_v14 = vld [vmem:[%s6296_s23 + $0x18] sm:$0xff]   ;;  %v6080_v15 = vld [vmem:[%s6296_s23 + $0x68] sm:$0xff]   ;;  %v6081_v16 = vld [vmem:[%s6296_s23 + $0x20] sm:$0xff]   ;;  %s6695_s15 = scalar_lea.vmem %s7448_s3, %s6064_s11 }
  0x12   : > { %5786 = vmatpush3.bf16.msra.mxu0 %v1409_v7  ;;  %5748 = vmatpush3.bf16.msra.mxu1 %v903_v10  ;;  %v6082_v17 = vld [vmem:[%s6296_s23 + $0x70] sm:$0xff]   ;;  %v6083_v18 = vld [vmem:[%s6296_s23 + $0x28] sm:$0xff]   ;;  %v6084_v19 = vld [vmem:[%s6296_s23 + $0x78] sm:$0xff]  }
  0x13   : > { %5715 = vmatprep.mubr.msk.bf16.mxu0 %vm304_vm1, %v6077_v12  ;;  %5735 = vmatprep.mubr.msk.bf16.mxu1 %vm304_vm1, %v6078_v13  ;;  %v6085_v20 = vld [vmem:[%s6296_s23 + $0x30] sm:$0xff]   ;;  %v6086_v21 = vld [vmem:[%s6296_s23 + $0x80] sm:$0xff]   ;;  %v6091_v23 = vld [vmem:[%s6296_s23 + $0x8] sm:$0xff]  }
  0x14   : > { %6057 = vmatprep.subr.msk.bf16.mxu1 %vm359_vm0, %v6306_v8  ;;  %6058 = vmatprep.subr.msk.bf16.mxu0 %vm359_vm0, %v6314_v11  ;;  %v6090_v22 = vld [vmem:[%s6296_s23] sm:$0xff]   ;;  %v713_v26 = vshll.u32 %v6091_v23, 16  ;;  %v6093_v27 = vld [vmem:[%s6296_s23 + $0x10] sm:$0xff]   ;;  %v6087_v28 = vld [vmem:[%s6296_s23 + $0x38] sm:$0xff]   ;;  %v717_v35 = vshrl.u32 %v6091_v23, 16  ;;  %v2555_v8 = vsel %vm359_vm0, %v6314_v11, 0 }
  0x15   : > { %v706_v24 = vshrl.u32 %v6090_v22, 16  ;;  %v708_v25 = vshll.u32 %v6090_v22, 16  ;;  %v6094_v31 = vld [vmem:[%s6296_s23 + $0x18] sm:$0xff]   ;;  %v6088_v32 = vld [vmem:[%s6296_s23 + $0x88] sm:$0x7f]   ;;  %v6089_v34 = vld [vmem:[%s6296_s23 + $0x40] sm:$0xff]  }
  0x16   : > { %v715_v30 = vrot.slane %v713_v26, 1  ;;  %v721_v36 = vshll.u32 %v6093_v27, 16  ;;  %v6096_v37 = vld [vmem:[%s6296_s23 + $0x8] sm:$0xff]   ;;  %v6095_v38 = vld [vmem:[%s6296_s23] sm:$0xfe]   ;;  %v725_v40 = vshrl.u32 %v6093_v27, 16 }
  0x17   : > { %v710_v29 = vrot.slane %v708_v25, 1  ;;  %v729_v41 = vshll.u32 %v6094_v31, 16  ;;  %v6097_v42 = vld [vmem:[%s6296_s23 + $0x20] sm:$0xff]   ;;  %v1319_v45 = vrot.slane %v6095_v38, 1  ;;  %v1320_v46 = vrot.slane %v6096_v37, 1  ;;  %v6099_v49 = vld [vmem:[%s6296_s23 + $0x28] sm:$0xff]  }
  0x18   : > { %v723_v43 = vrot.slane %v721_v36, 1  ;;  %v719_v44 = vor.u32 %v717_v35, %v715_v30  ;;  %v6092_v50 = vld [vmem:[%s6296_s23 + $0x48] sm:$0xff]   ;;  %v737_v51 = vshll.u32 %v6097_v42, 16  ;;  %v6098_v52 = vld [vmem:[%s6296_s23 + $0x10] sm:$0xff]   ;;  %v733_v55 = vshrl.u32 %v6094_v31, 16  ;;  %v6100_v56 = vld [vmem:[%s6296_s23 + $0x18] sm:$0xff]  }
  0x19   : > { %5716 = vmatmul.mubr.msk.bf16.gmra.mxu0 %vm304_vm1, %v6079_v14  ;;  %5736 = vmatmul.mubr.msk.bf16.gmra.mxu1 %vm304_vm1, %v6080_v15  ;;  %v711_v33 = vor.u32 %v710_v29, %v706_v24  ;;  %v731_v48 = vrot.slane %v729_v41, 1  ;;  %v1321_v54 = vsel %vm1318_vm3, %v1319_v45, %v1320_v46  ;;  %v741_v60 = vshrl.u32 %v6097_v42, 16  ;;  %v6101_v0 = vld [vmem:[%s6296_s23 + $0x30] sm:$0xff]   ;;  %v6103_v5 = vld [vmem:[%s6296_s23 + $0x38] sm:$0xff]   ;;  %v6102_v6 = vld [vmem:[%s6296_s23 + $0x20] sm:$0xff]  }
  0x1a   : > { %5719 = vmatprep.mubr.msk.bf16.mxu0 %vm304_vm1, %v6081_v16  ;;  %5739 = vmatprep.mubr.msk.bf16.mxu1 %vm304_vm1, %v6082_v17  ;;  %v727_v47 = vor.u32 %v725_v40, %v723_v43  ;;  %v724_v53 = vsel %vm704_vm2, %v719_v44, %v723_v43  ;;  %v745_v61 = vshll.u32 %v6099_v49, 16  ;;  %v739_v62 = vrot.slane %v737_v51, 1  ;;  %v6104_v13 = vld [vmem:[%s6296_s23 + $0x28] sm:$0xff]   ;;  %v6109_v36 = vld [vmem:[%s6296_s23 + $0x50] sm:$0xff]   ;;  %v6111_v41 = vld [vmem:[%s6296_s23 + $0x58] sm:$0xff]  }
  0x1b   : > { %v716_v39 = vsel %vm704_vm2, %v711_v33, %v715_v30  ;;  %v1322_v63 = vrot.slane %v6098_v52, 1  ;;  %v735_v1 = vor.u32 %v733_v55, %v731_v48  ;;  %v1324_v2 = vrot.slane %v6100_v56, 1  ;;  %v6388_v14 = vld [vmem:[%s7446_s1 + $0xc] sm:$0x3]  ;;  %v6110_v45 = vld [vmem:[%s6296_s23 + $0x40] sm:$0xff]  }
  0x1c   : > { %v732_v59 = vsel %vm704_vm2, %v727_v47, %v731_v48  ;;  %v743_v3 = vor.u32 %v741_v60, %v739_v62  ;;  %v747_v4 = vrot.slane %v745_v61, 1  ;;  %v753_v9 = vshll.u32 %v6101_v0, 16  ;;  %v6107_v25 = vld [vmem:[%s6296_s23 + $0x48] sm:$0xff]   ;;  %v6113_v56 = vld [vmem:[%s6296_s23 + $0x60] sm:$0xff]  }
  0x1d   : > { %v1323_v7 = vsel %vm1318_vm3, %v1320_v46, %v1322_v63  ;;  %v740_v10 = vsel %vm704_vm2, %v735_v1, %v739_v62  ;;  %v749_v12 = vshrl.u32 %v6099_v49, 16  ;;  %v1325_v16 = vsel %vm1318_vm3, %v1322_v63, %v1324_v2  ;;  %v6112_v52 = vld [vmem:[%s6296_s23 + $0x48] sm:$0xff]   ;;  %v6114_v1 = vld [vmem:[%s6296_s23 + $0x50] sm:$0xff]  }
  0x1e   : > { %v748_v15 = vsel %vm704_vm2, %v743_v3, %v747_v4  ;;  %v757_v17 = vshrl.u32 %v6101_v0, 16  ;;  %v1326_v11 = vrot.slane %v6102_v6, 1  ;;  %v1328_v22 = vrot.slane %v6104_v13, 1  ;;  %v6115_v62 = vld [vmem:[%s6296_s23 + $0x68] sm:$0xff]  }
  0x1f   : > { %v765_v31 = vshrl.u32 %v6103_v5, 16  ;;  %v777_v35 = vshll.u32 %v6107_v25, 16  ;;  %v785_v44 = vshll.u32 %v6109_v36, 16  ;;  %v781_v47 = vshrl.u32 %v6107_v25, 16 }
  0x20   : > { %v1327_v26 = vsel %vm1318_vm3, %v1324_v2, %v1326_v11  ;;  %v1329_v30 = vsel %vm1318_vm3, %v1326_v11, %v1328_v22  ;;  %v793_v51 = vshll.u32 %v6111_v41, 16  ;;  %v1334_v55 = vrot.slane %v6110_v45, 1 }
  0x21   : > { %5720 = vmatmul.mubr.msk.bf16.gmra.mxu0 %vm304_vm1, %v6083_v18  ;;  %5740 = vmatmul.mubr.msk.bf16.gmra.mxu1 %vm304_vm1, %v6084_v19  ;;  %v761_v18 = vshll.u32 %v6103_v5, 16  ;;  %v755_v19 = vrot.slane %v753_v9, 1  ;;  %v779_v43 = vrot.slane %v777_v35, 1  ;;  %v801_v0 = vshll.u32 %v6113_v56, 16  ;;  %v6116_v5 = vld [vmem:[%s6296_s23 + $0x58] sm:$0xff]   ;;  %v6117_v9 = vld [vmem:[%s6296_s23 + $0x70] sm:$0xff]  }
  0x22   : > { %5723 = vmatprep.mubr.msk.bf16.mxu0 %vm304_vm1, %v6085_v20  ;;  %5743 = vmatprep.mubr.msk.bf16.mxu1 %vm304_vm1, %v6086_v21  ;;  %v6105_v20 = vld [vmem:[%s6296_s23 + $0x40] sm:$0xff]   ;;  %v751_v21 = vor.u32 %v749_v12, %v747_v4  ;;  %v795_v61 = vrot.slane %v793_v51, 1  ;;  %v797_v4 = vshrl.u32 %v6111_v41, 16  ;;  %v1338_v12 = vrot.slane %v6114_v1, 1  ;;  %v6123_v35 = vld [vmem:[%s6296_s23 + $0x88] sm:$0xff]  }
  0x23   : > { %v759_v23 = vor.u32 %v757_v17, %v755_v19  ;;  %v763_v24 = vrot.slane %v761_v18, 1  ;;  %v769_v27 = vshll.u32 %v6105_v20, 16  ;;  %v6119_v18 = vld [vmem:[%s6296_s23 + $0x78] sm:$0xff]   ;;  %v817_v11 = vshll.u32 %v6117_v9, 16 }
  0x24   : > { %v756_v29 = vsel %vm704_vm2, %v751_v21, %v755_v19  ;;  %v799_v13 = vor.u32 %v797_v4, %v795_v61  ;;  %v6118_v21 = vld [vmem:[%s6296_s23 + $0x60] sm:$0xff]   ;;  %v829_v41 = vshrl.u32 %v6119_v18, 16  ;;  %v841_v45 = vshll.u32 %v6123_v35, 16 }
  0x25   : > { %v764_v33 = vsel %vm704_vm2, %v759_v23, %v763_v24  ;;  %v771_v37 = vrot.slane %v769_v27, 1  ;;  %v825_v27 = vshll.u32 %v6119_v18, 16 }
  0x26   : > { %v843_v51 = vrot.slane %v841_v45, 1 }
  0x29   : > { %5724 = vmatmul.mubr.msk.bf16.gmra.mxu0 %vm304_vm1, %v6087_v28  ;;  %5744 = vmatmul.mubr.msk.bf16.gmra.mxu1 %vm304_vm1, %v6088_v32  ;;  %v6106_v28 = vld [vmem:[%s6296_s23 + $0x30] sm:$0xff]   ;;  %v6108_v32 = vld [vmem:[%s6296_s23 + $0x38] sm:$0xff]  }
  0x2a   : > { %5727 = vmatprep.mubr.msk.bf16.mxu0 %vm304_vm1, %v6089_v34  ;;  %5749 = vmatprep.mubr.msk.bf16.mxu1 %vm304_vm1, %v716_v39  ;;  %v773_v34 = vshrl.u32 %v6105_v20, 16  ;;  %v1330_v38 = vrot.slane %v6106_v28, 1  ;;  %v767_v39 = vor.u32 %v765_v31, %v763_v24  ;;  %v1332_v40 = vrot.slane %v6108_v32, 1 }
  0x2b   : > { %v813_v20 = vshrl.u32 %v6115_v62, 16  ;;  %v819_v28 = vrot.slane %v817_v11, 1 }
  0x2c   : > { %v775_v42 = vor.u32 %v773_v34, %v771_v37  ;;  %v1331_v46 = vsel %vm1318_vm3, %v1328_v22, %v1330_v38  ;;  %v772_v48 = vsel %vm704_vm2, %v767_v39, %v771_v37  ;;  %v1333_v49 = vsel %vm1318_vm3, %v1330_v38, %v1332_v40  ;;  %v6120_v22 = vld [vmem:[%s6296_s23 + $0x68] sm:$0xff]   ;;  %v6122_v38 = vld [vmem:[%s6296_s23 + $0x70] sm:$0xff]  }
  0x2d   : > { %v1335_v63 = vsel %vm1318_vm3, %v1332_v40, %v1334_v55  ;;  %v1344_v32 = vrot.slane %v6120_v22, 1  ;;  %v827_v34 = vrot.slane %v825_v27, 1 }
  0x31   : > { %5728 = vmatmul.mubr.msk.bf16.gmra.mxu0 %vm304_vm1, %v6092_v50  ;;  %5750 = vmatmul.mubr.msk.bf16.vlgmr.msra.gmra.mxu1 %vm304_vm1, %v724_v53  ;;  %v789_v50 = vshrl.u32 %v6109_v36, 16  ;;  %v780_v53 = vsel %vm704_vm2, %v775_v42, %v779_v43  ;;  %v6124_v42 = vld [vmem:[%s6296_s23 + $0x78] sm:$0xff]  }
  0x32   : > { %5787 = vmatprep.mubr.msk.bf16.mxu0 %vm304_vm1, %v1321_v54  ;;  %5824 = vmatpush3.bf16.msra.mxu1 %v1914_v58  ;;  %v787_v54 = vrot.slane %v785_v44, 1  ;;  %v783_v58 = vor.u32 %v781_v47, %v779_v43  ;;  %v1346_v47 = vrot.slane %v6122_v38, 1  ;;  %v6135_v38 = vld [vmem:[%s6296_s23 + $0x30] sm:$0xff]  }
  0x33   : > { %5753 = vmatprep.mubr.msk.bf16.mxu1 %vm304_vm1, %v732_v59  ;;  %6059 = vmatprep.subr.msk.bf16.mxu1 %vm359_vm0, %v6366_v57  ;;  %v1336_v59 = vrot.slane %v6112_v52, 1  ;;  %v6125_v52 = vld [vmem:[%s6296_s23 + $0x80] sm:$0xff]  }
  0x34   : > { %v791_v60 = vor.u32 %v789_v50, %v787_v54  ;;  %v788_v2 = vsel %vm704_vm2, %v783_v58, %v787_v54  ;;  %v1347_v54 = vsel %vm1318_vm3, %v1344_v32, %v1346_v47 }
  0x35   : > { %v1337_v3 = vsel %vm1318_vm3, %v1334_v55, %v1336_v59  ;;  %v1339_v19 = vsel %vm1318_vm3, %v1336_v59, %v1338_v12  ;;  %v6132_v55 = vld [vmem:[%s6296_s23 + $0x10] sm:$0xff]  }
  0x36   : > { %v796_v6 = vsel %vm704_vm2, %v791_v60, %v795_v61  ;;  %v6128_v59 = vld [vmem:[%s6296_s23 + $0x10] sm:$0xff]   ;;  %v6131_v60 = vld [vmem:[%s6296_s23 + $0x8] sm:$0xfe]  }
  0x37   : > { %v2335_v4 = vshrl.u32 %v6131_v60, 16 }
  0x39   : > { %5788 = vmatmul.mubr.msk.bf16.vlgmr.msra.gmra.mxu0 %vm304_vm1, %v1323_v7  ;;  %5754 = vmatmul.mubr.msk.bf16.gmra.mxu1 %vm304_vm1, %v740_v10  ;;  %v805_v7 = vshrl.u32 %v6113_v56, 16  ;;  %v803_v10 = vrot.slane %v801_v0, 1  ;;  %v1350_v0 = vrot.slane %v6125_v52, 1  ;;  %v6137_v52 = vld [vmem:[%s6296_s23 + $0x38] sm:$0xff]  }
  0x3a   : > { %5862 = vmatpush3.bf16.msra.mxu0 %v2555_v8  ;;  %5757 = vmatprep.mubr.msk.bf16.mxu1 %vm304_vm1, %v748_v15  ;;  %v809_v8 = vshll.u32 %v6115_v62, 16  ;;  %v1340_v15 = vrot.slane %v6116_v5, 1  ;;  %v6127_v62 = vld [vmem:[%s6296_s23 + $0x8] sm:$0xfe]   ;;  %v2338_v5 = vshll.u32 %v6131_v60, 16 }
  0x3b   : > { %5791 = vmatprep.mubr.msk.bf16.mxu0 %vm304_vm1, %v1325_v16  ;;  %6060 = vmatprep.subr.msk.bf16.mxu0 %vm359_vm0, %v6388_v14  ;;  %v807_v16 = vor.u32 %v805_v7, %v803_v10  ;;  %v804_v23 = vsel %vm704_vm2, %v799_v13, %v803_v10  ;;  %v1825_v7 = vrot.slane %v6128_v59, 1 }
  0x3c   : > { %v811_v17 = vrot.slane %v809_v8, 1  ;;  %v1341_v24 = vsel %vm1318_vm3, %v1338_v12, %v1340_v15  ;;  %v6129_v8 = vld [vmem:[%s6296_s23 + $0x18] sm:$0xff]  }
  0x3e   : > { %v812_v25 = vsel %vm704_vm2, %v807_v16, %v811_v17  ;;  %v815_v31 = vor.u32 %v813_v20, %v811_v17  ;;  %v2337_v16 = vrot.slane %v2335_v4, 1  ;;  %v2340_v17 = vrot.slane %v2338_v5, 2  ;;  %v6136_v20 = vld [vmem:[%s6296_s23 + $0x20] sm:$0xff]  }
  0x3f   : > { %v2361_v27 = vshrl.u32 %v6136_v20, 16 }
  0x40   : > { %v820_v39 = vsel %vm704_vm2, %v815_v31, %v819_v28  ;;  %v6138_v31 = vld [vmem:[%s6296_s23 + $0x28] sm:$0xff]  }
  0x41   : > { %5792 = vmatmul.mubr.msk.bf16.gmra.mxu0 %vm304_vm1, %v1327_v26  ;;  %5758 = vmatmul.mubr.msk.bf16.gmra.mxu1 %vm304_vm1, %v756_v29  ;;  %v821_v26 = vshrl.u32 %v6117_v9, 16  ;;  %v1342_v29 = vrot.slane %v6118_v21, 1  ;;  %v6134_v9 = vld [vmem:[%s6296_s23 + $0x18] sm:$0xff]  }
  0x42   : > { %5795 = vmatprep.mubr.msk.bf16.mxu0 %vm304_vm1, %v1329_v30  ;;  %5761 = vmatprep.mubr.msk.bf16.mxu1 %vm304_vm1, %v764_v33  ;;  %v6121_v30 = vld [vmem:[%s6296_s23 + $0x80] sm:$0xff]   ;;  %v2352_v21 = vshrl.u32 %v6134_v9, 16  ;;  %v2355_v22 = vshll.u32 %v6134_v9, 16  ;;  %v6146_v9 = vld [vmem:[%s6296_s23 + $0x48] sm:$0xff]  }
  0x43   : > { %v823_v33 = vor.u32 %v821_v26, %v819_v28  ;;  %v1343_v36 = vsel %vm1318_vm3, %v1340_v15, %v1342_v29  ;;  %v833_v37 = vshll.u32 %v6121_v30, 16  ;;  %v1345_v40 = vsel %vm1318_vm3, %v1342_v29, %v1344_v32  ;;  %v6130_v15 = vld [vmem:[%s6296_s23 + $0x20] sm:$0xff]   ;;  %v6140_v32 = vld [vmem:[%s6296_s23 + $0x30] sm:$0xff]  }
  0x44   : > { %v837_v44 = vshrl.u32 %v6121_v30, 16  ;;  %v1829_v26 = vrot.slane %v6130_v15, 1  ;;  %v2364_v28 = vshll.u32 %v6136_v20, 16  ;;  %v2354_v29 = vrot.slane %v2352_v21, 1 }
  0x45   : > { %v828_v43 = vsel %vm704_vm2, %v823_v33, %v827_v34  ;;  %v2357_v30 = vrot.slane %v2355_v22, 2  ;;  %v2382_v45 = vshll.u32 %v6140_v32, 16  ;;  %v2406_v20 = vshrl.u32 %v6146_v9, 16 }
  0x49   : > { %5796 = vmatmul.mubr.msk.bf16.gmra.mxu0 %vm304_vm1, %v1331_v46  ;;  %5762 = vmatmul.mubr.msk.bf16.gmra.mxu1 %vm304_vm1, %v772_v48  ;;  %v835_v46 = vrot.slane %v833_v37, 1  ;;  %v831_v48 = vor.u32 %v829_v41, %v827_v34  ;;  %v2358_v41 = vor.u32 %v2357_v30, %v2354_v29  ;;  %v2408_v29 = vrot.slane %v2406_v20, 1  ;;  %v6150_v30 = vld [vmem:[%s6296_s23 + $0x58] sm:$0xff]  }
  0x4a   : > { %5799 = vmatprep.mubr.msk.bf16.mxu0 %vm304_vm1, %v1333_v49  ;;  %5765 = vmatprep.mubr.msk.bf16.mxu1 %vm304_vm1, %v780_v53  ;;  %v1348_v49 = vrot.slane %v6124_v42, 1  ;;  %v6126_v53 = vld [vmem:[%s6296_s23 + $0x88] sm:$0xff]  }
  0x4b   : > { %v839_v50 = vor.u32 %v837_v44, %v835_v46  ;;  %v836_v56 = vsel %vm704_vm2, %v831_v48, %v835_v46  ;;  %v1352_v1 = vrot.slane %v6126_v53, 1  ;;  %v6496_v42 = vld [vmem:[%s7446_s1 + $0xe] sm:$0x3]  ;;  %v2379_v44 = vshrl.u32 %v6140_v32, 16 }
  0x4c   : > { %v1349_v58 = vsel %vm1318_vm3, %v1346_v47, %v1348_v49  ;;  %v1351_v12 = vsel %vm1318_vm3, %v1348_v49, %v1350_v0  ;;  %v3578_v47 = vsel %vm359_vm0, %v6388_v14, 0  ;;  %v1833_v48 = vrot.slane %v6135_v38, 1 }
  0x4d   : > { %v844_v61 = vsel %vm704_vm2, %v839_v50, %v843_v51  ;;  %v1353_v13 = vsel %vm1318_vm3, %v1350_v0, %v1352_v1  ;;  %v6142_v50 = vld [vmem:[%s6296_s23 + $0x38] sm:$0xff]  }
  0x51   : > { %5800 = vmatmul.mubr.msk.bf16.gmra.mxu0 %vm304_vm1, %v1335_v63  ;;  %5766 = vmatmul.mubr.msk.bf16.gmra.mxu1 %vm304_vm1, %v788_v2  ;;  %v845_v63 = vshrl.u32 %v6123_v35, 16  ;;  %v2343_v2 = vshrl.u32 %v6132_v55, 16  ;;  %v6133_v35 = vld [vmem:[%s6296_s23 + $0x28] sm:$0xff]  }
  0x52   : > { %5803 = vmatprep.mubr.msk.bf16.mxu0 %vm304_vm1, %v1337_v3  ;;  %5769 = vmatprep.mubr.msk.bf16.mxu1 %vm304_vm1, %v796_v6  ;;  %v2346_v3 = vshll.u32 %v6132_v55, 16  ;;  %v1824_v6 = vrot.slane %v6127_v62, 1  ;;  %v1831_v46 = vrot.slane %v6133_v35, 1  ;;  %v2381_v55 = vrot.slane %v2379_v44, 1 }
  0x53   : > { %v847_v10 = vor.u32 %v845_v63, %v843_v51  ;;  %v2345_v18 = vrot.slane %v2343_v2, 1  ;;  %v2388_v62 = vshrl.u32 %v6142_v50, 16  ;;  %v6517_v63 = vld [vmem:[%s7446_s1 + $0x10] sm:$0x3] }
  0x54   : > { %v2348_v11 = vrot.slane %v2346_v3, 2  ;;  %v1832_v59 = vsel %vm1318_vm3, %v1829_v26, %v1831_v46  ;;  %v1834_v60 = vsel %vm1318_vm3, %v1831_v46, %v1833_v48  ;;  %v1835_v3 = vrot.slane %v6137_v52, 1 }
  0x56   : > { %v1836_v15 = vsel %vm1318_vm3, %v1833_v48, %v1835_v3  ;;  %v6149_v48 = vld [vmem:[%s6296_s23 + $0x68] sm:$0xff]  }
  0x59   : > { %5804 = vmatmul.mubr.msk.bf16.gmra.mxu0 %vm304_vm1, %v1339_v19  ;;  %5770 = vmatmul.mubr.msk.bf16.gmra.mxu1 %vm304_vm1, %v804_v23  ;;  %v1826_v19 = vsel %vm1318_vm3, %v1824_v6, %v1825_v7  ;;  %v1827_v23 = vrot.slane %v6129_v8, 1  ;;  %v2390_v8 = vrot.slane %v2388_v62, 1 }
  0x5a   : > { %5807 = vmatprep.mubr.msk.bf16.mxu0 %vm304_vm1, %v1341_v24  ;;  %5773 = vmatprep.mubr.msk.bf16.mxu1 %vm304_vm1, %v812_v25  ;;  %v2341_v24 = vor.u32 %v2340_v17, %v2337_v16  ;;  %v2349_v25 = vor.u32 %v2348_v11, %v2345_v18  ;;  %v6148_v18 = vld [vmem:[%s6296_s23 + $0x50] sm:$0xff]  }
  0x5b   : > { %v1828_v33 = vsel %vm1318_vm3, %v1825_v7, %v1827_v23  ;;  %v1830_v37 = vsel %vm1318_vm3, %v1827_v23, %v1829_v26  ;;  %v6141_v7 = vld [vmem:[%s6296_s23 + $0x48] sm:$0xff]   ;;  %v2409_v23 = vshll.u32 %v6146_v9, 16  ;;  %v2418_v26 = vshll.u32 %v6148_v18, 16 }
  0x5c   : > { %v2350_v34 = vsel %vm2333_vm4, %v2341_v24, %v2349_v25  ;;  %v2359_v51 = vsel %vm2333_vm4, %v2349_v25, %v2358_v41  ;;  %v1839_v21 = vrot.slane %v6141_v7, 1  ;;  %v2415_v25 = vshrl.u32 %v6148_v18, 16  ;;  %v6158_v7 = vld [vmem:[%s6296_s23 + $0x78] sm:$0xff]   ;;  %v6155_v18 = vld [vmem:[%s6296_s23 + $0x80] sm:$0xff]  }
  0x5d   : > { %v2411_v32 = vrot.slane %v2409_v23, 2 }
  0x61   : > { %5808 = vmatmul.mubr.msk.bf16.gmra.mxu0 %vm304_vm1, %v1343_v36  ;;  %5774 = vmatmul.mubr.msk.bf16.gmra.mxu1 %vm304_vm1, %v820_v39  ;;  %v3067_v36 = vsel %vm359_vm0, %v6366_v57, 0  ;;  %v2363_v39 = vrot.slane %v2361_v27, 1  ;;  %v2370_v57 = vshrl.u32 %v6138_v31, 16 }
  0x62   : > { %5811 = vmatprep.mubr.msk.bf16.mxu0 %vm304_vm1, %v1345_v40  ;;  %5777 = vmatprep.mubr.msk.bf16.mxu1 %vm304_vm1, %v828_v43  ;;  %v2366_v40 = vrot.slane %v2364_v28, 2  ;;  %v2373_v43 = vshll.u32 %v6138_v31, 16  ;;  %v6145_v28 = vld [vmem:[%s6296_s23 + $0x58] sm:$0xff]  }
  0x63   : > { %v2372_v53 = vrot.slane %v2370_v57, 1  ;;  %v2427_v57 = vshll.u32 %v6150_v30, 16  ;;  %v1843_v44 = vrot.slane %v6145_v28, 1 }
  0x64   : > { %v2367_v49 = vor.u32 %v2366_v40, %v2363_v39  ;;  %v6147_v39 = vld [vmem:[%s6296_s23 + $0x60] sm:$0xff]   ;;  %v2424_v40 = vshrl.u32 %v6150_v30, 16 }
  0x65   : > { %v2429_v52 = vrot.slane %v2427_v57, 2 }
  0x66   : > { %v2368_v14 = vsel %vm2333_vm4, %v2358_v41, %v2367_v49  ;;  %v2412_v41 = vor.u32 %v2411_v32, %v2408_v29  ;;  %v6161_v32 = vld [vmem:[%s6296_s23 + $0x88] sm:$0xff]  }
  0x69   : > { %5812 = vmatmul.mubr.msk.bf16.gmra.mxu0 %vm304_vm1, %v1347_v54  ;;  %5778 = vmatmul.mubr.msk.bf16.gmra.mxu1 %vm304_vm1, %v836_v56  ;;  %v2375_v54 = vrot.slane %v2373_v43, 2  ;;  %v2384_v56 = vrot.slane %v2382_v45, 2 }
  0x6a   : > { %5815 = vmatprep.mubr.msk.bf16.mxu0 %vm304_vm1, %v1349_v58  ;;  %5781 = vmatprep.mubr.msk.bf16.mxu1 %vm304_vm1, %v844_v61  ;;  %v6144_v58 = vld [vmem:[%s6296_s23 + $0x40] sm:$0xff]  }
  0x6b   : > { %v6139_v61 = vld [vmem:[%s6296_s23 + $0x40] sm:$0xff]   ;;  %v2376_v0 = vor.u32 %v2375_v54, %v2372_v53  ;;  %v2397_v2 = vshrl.u32 %v6144_v58, 16  ;;  %v2385_v4 = vor.u32 %v2384_v56, %v2381_v55  ;;  %v2400_v5 = vshll.u32 %v6144_v58, 16  ;;  %v6156_v58 = vld [vmem:[%s6296_s23 + $0x70] sm:$0xff]  }
  0x6c   : > { %v1837_v6 = vrot.slane %v6139_v61, 1  ;;  %v1847_v61 = vrot.slane %v6149_v48, 1 }
  0x6d   : > { %v2386_v16 = vsel %vm2333_vm4, %v2376_v0, %v2385_v4  ;;  %v2402_v17 = vrot.slane %v2400_v5, 2  ;;  %v6153_v5 = vld [vmem:[%s6296_s23 + $0x78] sm:$0xff]  }
  0x6e   : > { %v1838_v11 = vsel %vm1318_vm3, %v1835_v3, %v1837_v6  ;;  %v2454_v3 = vshll.u32 %v6156_v58, 16  ;;  %v1851_v23 = vrot.slane %v6153_v5, 1  ;;  %v6167_v5 = vld [vmem:[%s6296_s23 + $0x20] sm:$0xff]  }
  0x71   : > { %5816 = vmatmul.mubr.msk.bf16.gmra.mxu0 %vm304_vm1, %v1351_v12  ;;  %5782 = vmatmul.mubr.msk.bf16.gmra.mxu1 %vm304_vm1, %v847_v10  ;;  %v2377_v10 = vsel %vm2333_vm4, %v2367_v49, %v2376_v0  ;;  %v2426_v49 = vrot.slane %v2424_v40, 1  ;;  %v2478_v40 = vshrl.u32 %v6161_v32, 16 }
  0x72   : > { %5819 = vmatprep.mubr.msk.bf16.mxu0 %vm304_vm1, %v1353_v13  ;;  %5825 = vmatprep.mubr.msk.bf16.mxu1 %vm304_vm1, %v1826_v19  ;;  %v2399_v13 = vrot.slane %v2397_v2, 1  ;;  %v6143_v19 = vld [vmem:[%s6296_s23 + $0x50] sm:$0xff]   ;;  %v2451_v2 = vshrl.u32 %v6156_v58, 16  ;;  %v6165_v58 = vld [vmem:[%s6296_s23 + $0x98] ss:$0 sps:$4 sm:$0x11]  }
  0x73   : > { %v1841_v27 = vrot.slane %v6143_v19, 1  ;;  %v2430_v62 = vor.u32 %v2429_v52, %v2426_v49  ;;  %v2463_v19 = vshll.u32 %v6158_v7, 16 }
  0x74   : > { %v2403_v24 = vor.u32 %v2402_v17, %v2399_v13 }
  0x75   : > { %v1842_v38 = vsel %vm1318_vm3, %v1839_v21, %v1841_v27  ;;  %v1844_v54 = vsel %vm1318_vm3, %v1841_v27, %v1843_v44  ;;  %v2465_v28 = vrot.slane %v2463_v19, 2 }
  0x79   : > { %5820 = vmatmul.mubr.msk.bf16.gmra.mxu0 %vm304_vm1, %v1352_v1  ;;  %5826 = vmatmul.mubr.msk.bf16.vlgmr.msra.gmra.mxu1 %vm304_vm1, %v1828_v33  ;;  %v2391_v1 = vshll.u32 %v6142_v50, 16  ;;  %v6152_v33 = vld [vmem:[%s6296_s23 + $0x60] sm:$0xff]   ;;  %v6154_v50 = vld [vmem:[%s6296_s23 + $0x68] sm:$0xff]  }
  0x7a   : > { %5863 = vmatprep.mubr.msk.bf16.mxu0 %vm304_vm1, %v2350_v34  ;;  %5900 = vmatpush3.bf16.msra.mxu1 %v3067_v36  ;;  %v1840_v34 = vsel %vm1318_vm3, %v1837_v6, %v1839_v21  ;;  %v2417_v36 = vrot.slane %v2415_v25, 1  ;;  %v2433_v43 = vshrl.u32 %v6152_v33, 16  ;;  %v2436_v46 = vshll.u32 %v6152_v33, 16  ;;  %v6162_v33 = vld [vmem:[%s6296_s23 + $0x90] sm:$0xff]  }
  0x7b   : > { %5829 = vmatprep.mubr.msk.bf16.mxu1 %vm304_vm1, %v1830_v37  ;;  %6061 = vmatprep.subr.msk.bf16.mxu1 %vm359_vm0, %v6496_v42  ;;  %v2393_v12 = vrot.slane %v2391_v1, 2  ;;  %v2420_v37 = vrot.slane %v2418_v26, 2  ;;  %v2445_v0 = vshll.u32 %v6154_v50, 16  ;;  %v1853_v25 = vrot.slane %v6155_v18, 1  ;;  %v6157_v26 = vld [vmem:[%s6296_s23 + $0x88] sm:$0xff]   ;;  %v6172_v18 = vld [vmem:[%s6296_s23 + $0x30] sm:$0xff]  }
  0x7c   : > { %v2435_v53 = vrot.slane %v2433_v43, 1  ;;  %v2438_v56 = vrot.slane %v2436_v46, 2  ;;  %v2487_v43 = vshrl.u32 %v6162_v33, 16 }
  0x7d   : > { %v2394_v22 = vor.u32 %v2393_v12, %v2390_v8  ;;  %v2421_v45 = vor.u32 %v2420_v37, %v2417_v36  ;;  %v2447_v9 = vrot.slane %v2445_v0, 2  ;;  %v1854_v36 = vsel %vm1318_vm3, %v1851_v23, %v1853_v25  ;;  %v6159_v37 = vld [vmem:[%s6296_s23 + $0x90] sm:$0xff]   ;;  %v6166_v0 = vld [vmem:[%s6296_s23 + $0x18] sm:$0xff]  }
  0x7e   : > { %v2439_v1 = vor.u32 %v2438_v56, %v2435_v53 }
  0x7f   : > { %v2395_v31 = vsel %vm2333_vm4, %v2385_v4, %v2394_v22  ;;  %v2404_v35 = vsel %vm2333_vm4, %v2394_v22, %v2403_v24  ;;  %v2422_v55 = vsel %vm2333_vm4, %v2412_v41, %v2421_v45  ;;  %v2431_v8 = vsel %vm2333_vm4, %v2421_v45, %v2430_v62 }
  0x80   : > { %v2440_v13 = vsel %vm2333_vm4, %v2430_v62, %v2439_v1  ;;  %v1857_v45 = vrot.slane %v6159_v37, 1  ;;  %v2496_v62 = vshll.u32 %v6165_v58, 16 }
  0x81   : > { %5864 = vmatmul.mubr.msk.bf16.vlgmr.msra.gmra.mxu0 %vm304_vm1, %v2359_v51  ;;  %5830 = vmatmul.mubr.msk.bf16.gmra.mxu1 %vm304_vm1, %v1832_v59  ;;  %v2413_v51 = vsel %vm2333_vm4, %v2403_v24, %v2412_v41  ;;  %v2481_v41 = vshll.u32 %v6161_v32, 16  ;;  %v6176_v32 = vld [vmem:[%s6296_s23 + $0x40] sm:$0xff]  }
  0x82   : > { %5938 = vmatpush3.bf16.msra.mxu0 %v3578_v47  ;;  %5833 = vmatprep.mubr.msk.bf16.mxu1 %vm304_vm1, %v1834_v60  ;;  %v1845_v47 = vrot.slane %v6147_v39, 1  ;;  %v6151_v60 = vld [vmem:[%s6296_s23 + $0x70] sm:$0xff]  }
  0x83   : > { %5867 = vmatprep.mubr.msk.bf16.mxu0 %vm304_vm1, %v2368_v14  ;;  %6062 = vmatprep.subr.msk.bf16.mxu0 %vm359_vm0, %v6517_v63  ;;  %v2442_v14 = vshrl.u32 %v6154_v50, 16  ;;  %v1849_v4 = vrot.slane %v6151_v60, 1  ;;  %v2483_v48 = vrot.slane %v2481_v41, 2  ;;  %v6178_v41 = vld [vmem:[%s6296_s23 + $0x48] sm:$0xff]  }
  0x84   : > { %v1846_v59 = vsel %vm1318_vm3, %v1843_v44, %v1845_v47  ;;  %v1848_v12 = vsel %vm1318_vm3, %v1845_v47, %v1847_v61  ;;  %v2490_v44 = vshll.u32 %v6162_v33, 16  ;;  %v2480_v47 = vrot.slane %v2478_v40, 1 }
  0x85   : > { %v2444_v6 = vrot.slane %v2442_v14, 1  ;;  %v1850_v17 = vsel %vm1318_vm3, %v1847_v61, %v1849_v4 }
  0x86   : > { %v2492_v52 = vrot.slane %v2490_v44, 2  ;;  %v2484_v56 = vor.u32 %v2483_v48, %v2480_v47  ;;  %v6180_v44 = vld [vmem:[%s6296_s23 + $0x50] sm:$0xff]  }
  0x87   : > { %v2448_v20 = vor.u32 %v2447_v9, %v2444_v6  ;;  %v2498_v6 = vrot.slane %v2496_v62, 2 }
  0x89   : > { %5868 = vmatmul.mubr.msk.bf16.gmra.mxu0 %vm304_vm1, %v2377_v10  ;;  %5834 = vmatmul.mubr.msk.bf16.gmra.mxu1 %vm304_vm1, %v1836_v15  ;;  %v6160_v10 = vld [vmem:[%s6296_s23 + $0x80] sm:$0xff]   ;;  %v2453_v15 = vrot.slane %v2451_v2, 1  ;;  %v2449_v29 = vsel %vm2333_vm4, %v2439_v1, %v2448_v20  ;;  %v6168_v2 = vld [vmem:[%s6296_s23 + $0x10] sm:$0xfc]  }
  0x8a   : > { %5871 = vmatprep.mubr.msk.bf16.mxu0 %vm304_vm1, %v2386_v16  ;;  %5837 = vmatprep.mubr.msk.bf16.mxu1 %vm304_vm1, %v1838_v11  ;;  %v2456_v16 = vrot.slane %v2454_v3, 2  ;;  %v2460_v11 = vshrl.u32 %v6158_v7, 16  ;;  %v2469_v21 = vshrl.u32 %v6160_v10, 16  ;;  %v2472_v22 = vshll.u32 %v6160_v10, 16  ;;  %v6169_v3 = vld [vmem:[%s6296_s23 + $0x18] sm:$0xff]  }
  0x8b   : > { %v2978_v7 = vrot.slane %v6166_v0, 2  ;;  %v3487_v9 = vrot.slane %v6169_v3, 2  ;;  %v2980_v10 = vrot.slane %v6167_v5, 2  ;;  %v6184_v5 = vld [vmem:[%s6296_s23 + $0x60] sm:$0xff]  }
  0x8c   : > { %v2457_v24 = vor.u32 %v2456_v16, %v2453_v15  ;;  %v2462_v27 = vrot.slane %v2460_v11, 1  ;;  %v2471_v30 = vrot.slane %v2469_v21, 1  ;;  %v6171_v15 = vld [vmem:[%s6296_s23 + $0x20] sm:$0xff]   ;;  %v4223_v11 = vsel %vm359_vm0, %v6496_v42, 0 }
  0x8d   : > { %v2981_v19 = vsel %vm2974_vm5, %v2978_v7, %v2980_v10  ;;  %v3489_v21 = vrot.slane %v6171_v15, 2 }
  0x8e   : > { %v2466_v39 = vor.u32 %v2465_v28, %v2462_v27  ;;  %v4735_v28 = vsel %vm359_vm0, %v6517_v63, 0 }
  0x8f   : > { %v3490_v42 = vsel %vm2974_vm5, %v3487_v9, %v3489_v21 }
  0x90   : > { %v2467_v46 = vsel %vm2333_vm4, %v2457_v24, %v2466_v39 }
  0x91   : > { %5872 = vmatmul.mubr.msk.bf16.gmra.mxu0 %vm304_vm1, %v2395_v31  ;;  %5838 = vmatmul.mubr.msk.bf16.gmra.mxu1 %vm304_vm1, %v1840_v34  ;;  %v2474_v31 = vrot.slane %v2472_v22, 2  ;;  %v1852_v34 = vsel %vm1318_vm3, %v1849_v4, %v1851_v23  ;;  %v2984_v23 = vrot.slane %v6172_v18, 2 }
  0x92   : > { %5875 = vmatprep.mubr.msk.bf16.mxu0 %vm304_vm1, %v2404_v35  ;;  %5841 = vmatprep.mubr.msk.bf16.mxu1 %vm304_vm1, %v1842_v38  ;;  %v2458_v35 = vsel %vm2333_vm4, %v2448_v20, %v2457_v24  ;;  %v1855_v38 = vrot.slane %v6157_v26, 1  ;;  %v6173_v20 = vld [vmem:[%s6296_s23 + $0x28] sm:$0xff]   ;;  %v6175_v26 = vld [vmem:[%s6296_s23 + $0x30] sm:$0xff]  }
  0x93   : > { %v2475_v57 = vor.u32 %v2474_v31, %v2471_v30  ;;  %v3491_v24 = vrot.slane %v6173_v20, 2  ;;  %v3493_v33 = vrot.slane %v6175_v26, 2  ;;  %v6710_v26 = vld [vmem:[%s6296_s23 + $0x68] sm:$0xff]  }
  0x94   : > { %v1856_v49 = vsel %vm1318_vm3, %v1853_v25, %v1855_v38  ;;  %v1858_v53 = vsel %vm1318_vm3, %v1855_v38, %v1857_v45  ;;  %v6174_v25 = vld [vmem:[%s6296_s23 + $0x38] sm:$0xff]   ;;  %v6179_v38 = vld [vmem:[%s6296_s23 + $0x40] sm:$0xff]  }
  0x95   : > { %v2476_v50 = vsel %vm2333_vm4, %v2466_v39, %v2475_v57  ;;  %v2485_v61 = vsel %vm2333_vm4, %v2475_v57, %v2484_v56  ;;  %v3492_v31 = vsel %vm2974_vm5, %v3489_v21, %v3491_v24  ;;  %v2986_v63 = vrot.slane %v6174_v25, 2  ;;  %v6181_v57 = vld [vmem:[%s6296_s23 + $0x48] sm:$0xff]   ;;  %v6187_v21 = vld [vmem:[%s6296_s23 + $0x60] sm:$0xff]  }
  0x96   : > { %v3494_v37 = vsel %vm2974_vm5, %v3491_v24, %v3493_v33  ;;  %v3497_v48 = vrot.slane %v6179_v38, 2  ;;  %v6186_v25 = vld [vmem:[%s6296_s23 + $0x68] sm:$0xff]   ;;  %v3507_v38 = vrot.slane %v6710_v26, 2  ;;  %v6195_v26 = vld [vmem:[%s6296_s23 + $0x80] sm:$0xff]  }
  0x97   : > { %v2987_v39 = vsel %vm2974_vm5, %v2984_v23, %v2986_v63 }
  0x99   : > { %5876 = vmatmul.mubr.msk.bf16.gmra.mxu0 %vm304_vm1, %v2413_v51  ;;  %5842 = vmatmul.mubr.msk.bf16.gmra.mxu1 %vm304_vm1, %v1844_v54  ;;  %v2489_v51 = vrot.slane %v2487_v43, 1  ;;  %v6163_v54 = vld [vmem:[%s6296_s23 + $0x8] sm:$0xfc]  }
  0x9a   : > { %5879 = vmatprep.mubr.msk.bf16.mxu0 %vm304_vm1, %v2422_v55  ;;  %5845 = vmatprep.mubr.msk.bf16.mxu1 %vm304_vm1, %v1846_v59  ;;  %v6164_v55 = vld [vmem:[%s6296_s23 + $0x10] sm:$0xff]   ;;  %v2975_v60 = vrot.slane %v6163_v54, 2  ;;  %v2992_v54 = vrot.slane %v6180_v44, 2 }
  0x9b   : > { %v2493_v59 = vor.u32 %v2492_v52, %v2489_v51  ;;  %v2976_v14 = vrot.slane %v6164_v55, 2  ;;  %v2990_v51 = vrot.slane %v6178_v41, 2  ;;  %v3499_v52 = vrot.slane %v6181_v57, 2 }
  0x9d   : > { %v2494_v1 = vsel %vm2333_vm4, %v2484_v56, %v2493_v59  ;;  %v2977_v4 = vsel %vm2974_vm5, %v2975_v60, %v2976_v14  ;;  %v2979_v16 = vsel %vm2974_vm5, %v2976_v14, %v2978_v7  ;;  %v6183_v60 = vld [vmem:[%s6296_s23 + $0x50] sm:$0xff]   ;;  %v3500_v0 = vsel %vm2974_vm5, %v3497_v48, %v3499_v52 }
  0xa1   : > { %5880 = vmatmul.mubr.msk.bf16.gmra.mxu0 %vm304_vm1, %v2431_v8  ;;  %5846 = vmatmul.mubr.msk.bf16.gmra.mxu1 %vm304_vm1, %v1848_v12  ;;  %v3486_v8 = vrot.slane %v6168_v2, 2  ;;  %v2499_v12 = vsel %vm2333_vm4, %v2493_v59, %v2498_v6  ;;  %v6185_v2 = vld [vmem:[%s6296_s23 + $0x58] sm:$0xff]  }
  0xa2   : > { %5883 = vmatprep.mubr.msk.bf16.mxu0 %vm304_vm1, %v2440_v13  ;;  %5849 = vmatprep.mubr.msk.bf16.mxu1 %vm304_vm1, %v1850_v17  ;;  %v6170_v13 = vld [vmem:[%s6296_s23 + $0x28] sm:$0xff]   ;;  %v3503_v15 = vrot.slane %v6185_v2, 2 }
  0xa3   : > { %v3488_v17 = vsel %vm2974_vm5, %v3486_v8, %v3487_v9  ;;  %v2982_v22 = vrot.slane %v6170_v13, 2  ;;  %v3501_v9 = vrot.slane %v6183_v60, 2 }
  0xa5   : > { %v2983_v27 = vsel %vm2974_vm5, %v2980_v10, %v2982_v22  ;;  %v2985_v30 = vsel %vm2974_vm5, %v2982_v22, %v2984_v23  ;;  %v3502_v20 = vsel %vm2974_vm5, %v3499_v52, %v3501_v9 }
  0xa9   : > { %5884 = vmatmul.mubr.msk.bf16.gmra.mxu0 %vm304_vm1, %v2449_v29  ;;  %5850 = vmatmul.mubr.msk.bf16.gmra.mxu1 %vm304_vm1, %v1852_v34  ;;  %v6177_v29 = vld [vmem:[%s6296_s23 + $0x38] sm:$0xff]  }
  0xaa   : > { %5887 = vmatprep.mubr.msk.bf16.mxu0 %vm304_vm1, %v2458_v35  ;;  %5853 = vmatprep.mubr.msk.bf16.mxu1 %vm304_vm1, %v1854_v36  ;;  %v3495_v34 = vrot.slane %v6177_v29, 2  ;;  %v2988_v35 = vrot.slane %v6176_v32, 2  ;;  %v6637_v36 = vld [vmem:[%s7447_s2] ss:$0 sm:$0xff]  ;;  %v6714_v29 = vld [vmem:[%s6296_s23 + $0x70] sm:$0xff]  }
  0xab   : > { %v3000_v41 = vrot.slane %v6714_v29, 2 }
  0xac   : > { %v3496_v40 = vsel %vm2974_vm5, %v3493_v33, %v3495_v34  ;;  %v2989_v43 = vsel %vm2974_vm5, %v2986_v63, %v2988_v35  ;;  %v3498_v59 = vsel %vm2974_vm5, %v3495_v34, %v3497_v48  ;;  %v2991_v62 = vsel %vm2974_vm5, %v2988_v35, %v2990_v51  ;;  %v6191_v48 = vld [vmem:[%s6296_s23 + $0x70] sm:$0xff]  }
  0xad   : > { %v3505_v63 = vrot.slane %v6187_v21, 2 }
  0xb1   : > { %5888 = vmatmul.mubr.msk.bf16.gmra.mxu0 %vm304_vm1, %v2467_v46  ;;  %5854 = vmatmul.mubr.msk.bf16.gmra.mxu1 %vm304_vm1, %v1856_v49 }
  0xb2   : > { %5891 = vmatprep.mubr.msk.bf16.mxu0 %vm304_vm1, %v2476_v50  ;;  %5857 = vmatprep.mubr.msk.bf16.mxu1 %vm304_vm1, %v1858_v53 }
  0xb9   : > { %5892 = vmatmul.mubr.msk.bf16.gmra.mxu0 %vm304_vm1, %v2485_v61  ;;  %5858 = vmatmul.mubr.msk.bf16.gmra.mxu1 %vm304_vm1, %v1857_v45 }
  0xba   : > { %5895 = vmatprep.mubr.msk.bf16.mxu0 %vm304_vm1, %v2494_v1  ;;  %5901 = vmatprep.mubr.msk.bf16.mxu1 %vm304_vm1, %v2977_v4  ;;  %v6182_v1 = vld [vmem:[%s6296_s23 + $0x58] sm:$0xff]   ;;  %v2993_v4 = vsel %vm2974_vm5, %v2990_v51, %v2992_v54 }
  0xbb   : > { %v2994_v13 = vrot.slane %v6182_v1, 2  ;;  %v6752_v1 = vld [vmem:[%s6296_s23 + $0x80] sm:$0xff]  }
  0xbd   : > { %v2995_v24 = vsel %vm2974_vm5, %v2992_v54, %v2994_v13  ;;  %v3508_v54 = vsel %vm2974_vm5, %v3505_v63, %v3507_v38 }
  0xc1   : > { %5896 = vmatmul.mubr.msk.bf16.gmra.mxu0 %vm304_vm1, %v2499_v12  ;;  %5902 = vmatmul.mubr.msk.bf16.vlgmr.msra.gmra.mxu1 %vm304_vm1, %v2979_v16 }
  0xc2   : > { %5939 = vmatprep.mubr.msk.bf16.mxu0 %vm304_vm1, %v3488_v17  ;;  %5976 = vmatpush3.bf16.msra.mxu1 %v4223_v11  ;;  %v2996_v17 = vrot.slane %v6184_v5, 2 }
  0xc3   : > { %5905 = vmatprep.mubr.msk.bf16.mxu1 %vm304_vm1, %v2981_v19 }
  0xc9   : > { %5940 = vmatmul.mubr.msk.bf16.vlgmr.msra.gmra.mxu0 %vm304_vm1, %v3490_v42  ;;  %5906 = vmatmul.mubr.msk.bf16.gmra.mxu1 %vm304_vm1, %v2983_v27  ;;  %v3504_v42 = vsel %vm2974_vm5, %v3501_v9, %v3503_v15 }
  0xca   : > { %6014 = vmatpush3.bf16.msra.mxu0 %v4735_v28  ;;  %5909 = vmatprep.mubr.msk.bf16.mxu1 %vm304_vm1, %v2985_v30  ;;  %v2997_v28 = vsel %vm2974_vm5, %v2994_v13, %v2996_v17 }
  0xcb   : > { %5943 = vmatprep.mubr.msk.bf16.mxu0 %vm304_vm1, %v3492_v31 }
  0xd1   : > { %v5713_v45 = vpop.f32.mrf.mxu0  ;;  %5944 = vmatmul.mubr.msk.bf16.gmra.mxu0 %vm304_vm1, %v3494_v37  ;;  %v5733_v47 = vpop.f32.mrf.mxu1  ;;  %5910 = vmatmul.mubr.msk.bf16.gmra.mxu1 %vm304_vm1, %v2987_v39  ;;  %v2998_v37 = vrot.slane %v6186_v25, 2  ;;  %v6194_v25 = vld [vmem:[%s6296_s23 + $0x88] sm:$0xff]  }
  0xd2   : > { %v6649_v46 = vadd.f32 %v5713_v45, %v6637_v36  ;;  %5947 = vmatprep.mubr.msk.bf16.mxu0 %vm304_vm1, %v3496_v40  ;;  %v6654_v49 = vadd.f32 %v5733_v47, %v6637_v36  ;;  %5913 = vmatprep.mubr.msk.bf16.mxu1 %vm304_vm1, %v2989_v43  ;;  %v3506_v47 = vsel %vm2974_vm5, %v3503_v15, %v3505_v63  ;;  %v6202_v63 = vld [vmem:[%s6296_s23 + $0x18] sm:$0xff]  }
  0xd3   : > { %v6656_v50 = vpop.f32.mrf.mxu0  ;;  %v477_v53 = vpop.f32.mrf.mxu1 }
  0xd4   : > { %v6660_v55 = vadd.f32 %v6637_v36, %v477_v53  ;;  %v2999_v53 = vsel %vm2974_vm5, %v2996_v17, %v2998_v37 }
  0xd5   : > { %v6662_v56 = vpop.f32.mrf.mxu0  ;;  %v5734_v58 = vpop.f32.mrf.mxu1 }
  0xd6   : > { %v6667_v14 = vadd.f32 %v5734_v58, %v6637_v36  ;;  %v6190_v58 = vld [vmem:[%s6296_s23 + $0x78] sm:$0xff]  }
  0xd7   : > { %v6669_v61 = vpop.f32.mrf.mxu0  ;;  %v480_v3 = vpop.f32.mrf.mxu1  ;;  %v3002_v15 = vrot.slane %v6190_v58, 2  ;;  %v4007_v58 = vshrl.u32 %v6202_v63, 16 }
  0xd8   : > { %v6679_v6 = vadd.f32 %v6637_v36, %v480_v3 }
  0xd9   : > { %v6681_v7 = vpop.f32.mrf.mxu0  ;;  %5948 = vmatmul.mubr.msk.bf16.gmra.mxu0 %vm304_vm1, %v3498_v59  ;;  %v5737_v8 = vpop.f32.mrf.mxu1  ;;  %5914 = vmatmul.mubr.msk.bf16.gmra.mxu1 %vm304_vm1, %v2991_v62  ;;  %v6745_v59 = vld [vmem:[%s6296_s23 + $0x78] sm:$0xff]  }
  0xda   : > { %5951 = vmatprep.mubr.msk.bf16.mxu0 %vm304_vm1, %v3500_v0  ;;  %v6687_v10 = vadd.f32 %v5737_v8, %v6637_v36  ;;  %5917 = vmatprep.mubr.msk.bf16.mxu1 %vm304_vm1, %v2993_v4  ;;  %v3001_v0 = vsel %vm2974_vm5, %v2998_v37, %v3000_v41  ;;  %v3509_v8 = vrot.slane %v6191_v48, 2 }
  0xdb   : > { %v6689_v12 = vpop.f32.mrf.mxu0  ;;  %v493_v16 = vpop.f32.mrf.mxu1 }
  0xdc   : > { %v494_v18 = vadd.f32 %v6637_v36, %v493_v16  ;;  %v3511_v16 = vrot.slane %v6745_v59, 2  ;;  %v4010_v59 = vshll.u32 %v6202_v63, 16 }
  0xdd   : > { %v6698_v11 = vpop.f32.mrf.mxu0  ;;  %v5738_v19 = vpop.f32.mrf.mxu1 }
  0xde   : > { %564 = vst [vmem:[%s6695_s15 + $0xc0] sm:$0xff] %v494_v18  ;;  %v505_v22 = vadd.f32 %v5738_v19, %v6637_v36  ;;  %v3004_v19 = vrot.slane %v6752_v1, 2 }
  0xdf   : > { %v6704_v23 = vpop.f32.mrf.mxu0  ;;  %v496_v27 = vpop.f32.mrf.mxu1 }
  0xe0   : > { %567 = vst [vmem:[%s6695_s15 + $0xd8] sm:$0xff] %v505_v22  ;;  %v497_v30 = vadd.f32 %v6637_v36, %v496_v27  ;;  %v6779_v27 = vld [vmem:[%s6296_s23 + $0x90] sm:$0xff]   ;;  %v3005_v37 = vsel %vm2974_vm5, %v3002_v15, %v3004_v19 }
  0xe1   : > { %v5721_v31 = vpop.f32.mrf.mxu0  ;;  %5952 = vmatmul.mubr.msk.bf16.gmra.mxu0 %vm304_vm1, %v3502_v20  ;;  %v5741_v33 = vpop.f32.mrf.mxu1  ;;  %5918 = vmatmul.mubr.msk.bf16.gmra.mxu1 %vm304_vm1, %v2995_v24  ;;  %v3008_v48 = vrot.slane %v6779_v27, 2 }
  0xe2   : > { %v6720_v32 = vadd.f32 %v5721_v31, %v6637_v36  ;;  %5955 = vmatprep.mubr.msk.bf16.mxu0 %vm304_vm1, %v3504_v42  ;;  %565 = vst [vmem:[%s6695_s15 + $0xc8] sm:$0xff] %v497_v30  ;;  %v518_v34 = vadd.f32 %v5741_v33, %v6637_v36  ;;  %5921 = vmatprep.mubr.msk.bf16.mxu1 %vm304_vm1, %v2997_v28  ;;  %v6786_v33 = vld [vmem:[%s6296_s23 + $0x88] sm:$0xff]  }
  0xe3   : > { %v429_v35 = vpop.f32.mrf.mxu0  ;;  %v509_v40 = vpop.f32.mrf.mxu1  ;;  %v3510_v42 = vsel %vm2974_vm5, %v3507_v38, %v3509_v8  ;;  %v3003_v30 = vsel %vm2974_vm5, %v3000_v41, %v3002_v15  ;;  %v3512_v31 = vsel %vm2974_vm5, %v3509_v8, %v3511_v16  ;;  %v6201_v38 = vld [vmem:[%s6296_s23 + $0x10] sm:$0xfc]  }
  0xe4   : > { %v6729_v39 = vadd.f32 %v6637_v36, %v429_v35  ;;  %570 = vst [vmem:[%s6695_s15 + $0xf0] sm:$0xff] %v518_v34  ;;  %v510_v57 = vadd.f32 %v6637_v36, %v509_v40  ;;  %v3999_v1 = vshrl.u32 %v6201_v38, 16 }
  0xe5   : > { %v5722_v43 = vpop.f32.mrf.mxu0  ;;  %v5742_v45 = vpop.f32.mrf.mxu1 }
  0xe6   : > { %v6735_v44 = vadd.f32 %v5722_v43, %v6637_v36  ;;  %568 = vst [vmem:[%s6695_s15 + $0xe0] sm:$0xff] %v510_v57  ;;  %v521_v51 = vadd.f32 %v5742_v45, %v6637_v36  ;;  %v3006_v45 = vrot.slane %v6194_v25, 2  ;;  %v6829_v25 = vld [vmem:[%s6296_s23 + $0x98] sm:$0xff]  }
  0xe7   : > { %v432_v52 = vpop.f32.mrf.mxu0  ;;  %v512_v62 = vpop.f32.mrf.mxu1 }
  0xe8   : > { %v6748_v60 = vadd.f32 %v6637_v36, %v432_v52  ;;  %571 = vst [vmem:[%s6695_s15 + $0xf8] sm:$0xff] %v521_v51  ;;  %v513_v2 = vadd.f32 %v6637_v36, %v512_v62 }
  0xe9   : > { %v5725_v3 = vpop.f32.mrf.mxu0  ;;  %5956 = vmatmul.mubr.msk.bf16.gmra.mxu0 %vm304_vm1, %v3506_v47  ;;  %v5745_v5 = vpop.f32.mrf.mxu1  ;;  %5922 = vmatmul.mubr.msk.bf16.gmra.mxu1 %vm304_vm1, %v2999_v53  ;;  %v3513_v47 = vrot.slane %v6195_v26, 2  ;;  %v3515_v53 = vrot.slane %v6786_v33, 2  ;;  %v4009_v26 = vrot.slane %v4007_v58, 2  ;;  %v414_v33 = vadd.f32 %v6637_v36, %v6689_v12 }
  0xea   : > { %v6758_v4 = vadd.f32 %v5725_v3, %v6637_v36  ;;  %5959 = vmatprep.mubr.msk.bf16.mxu0 %vm304_vm1, %v3508_v54  ;;  %569 = vst [vmem:[%s6695_s15 + $0xe8] sm:$0xff] %v513_v2  ;;  %v534_v9 = vadd.f32 %v5745_v5, %v6637_v36  ;;  %5925 = vmatprep.mubr.msk.bf16.mxu1 %vm304_vm1, %v3001_v0  ;;  %v6808_v54 = vld [vmem:[%s6296_s23 + $0x98] ss:$0 sps:$4 sm:$0x11]   ;;  %v4002_v2 = vshll.u32 %v6201_v38, 16  ;;  %v6204_v5 = vld [vmem:[%s6296_s23 + $0x20] sm:$0xff]  }
  0xeb   : > { %v445_v13 = vpop.f32.mrf.mxu0  ;;  %v525_v18 = vpop.f32.mrf.mxu1  ;;  %v3514_v15 = vsel %vm2974_vm5, %v3511_v16, %v3513_v47 }
  0xec   : > { %v6767_v17 = vadd.f32 %v6637_v36, %v445_v13  ;;  %574 = vst [vmem:[%s6695_s15 + $0x110] sm:$0xff] %v534_v9  ;;  %v526_v20 = vadd.f32 %v6637_v36, %v525_v18  ;;  %v3007_v13 = vsel %vm2974_vm5, %v3004_v19, %v3006_v45  ;;  %v3009_v18 = vsel %vm2974_vm5, %v3006_v45, %v3008_v48 }
  0xed   : > { %v5726_v21 = vpop.f32.mrf.mxu0  ;;  %v5746_v24 = vpop.f32.mrf.mxu1  ;;  %v398_v19 = vadd.f32 %v6637_v36, %v6656_v50 }
  0xee   : > { %v6773_v22 = vadd.f32 %v5726_v21, %v6637_v36  ;;  %572 = vst [vmem:[%s6695_s15 + $0x100] sm:$0xff] %v526_v20  ;;  %v537_v28 = vadd.f32 %v5746_v24, %v6637_v36  ;;  %v6199_v20 = vld [vmem:[%s6296_s23 + $0x90] sm:$0xff]   ;;  %v3516_v24 = vsel %vm2974_vm5, %v3513_v47, %v3515_v53 }
  0xef   : > { %v448_v29 = vpop.f32.mrf.mxu0  ;;  %v528_v35 = vpop.f32.mrf.mxu1  ;;  %v3517_v47 = vrot.slane %v6199_v20, 2  ;;  %v422_v20 = vadd.f32 %v6681_v7, %v6637_v36 }
  0xf0   : > { %v6790_v34 = vadd.f32 %v6637_v36, %v448_v29  ;;  %575 = vst [vmem:[%s6695_s15 + $0x118] sm:$0x3f] %v537_v28  ;;  %v529_v40 = vadd.f32 %v6637_v36, %v528_v35  ;;  %v4012_v28 = vrot.slane %v4010_v59, 3  ;;  %v4016_v35 = vshrl.u32 %v6204_v5, 16 }
  0xf1   : > { %v5729_v57 = vpop.f32.mrf.mxu0  ;;  %5960 = vmatmul.mubr.msk.bf16.gmra.mxu0 %vm304_vm1, %v3510_v42  ;;  %v5751_v43 = vpop.f32.mrf.mxu1  ;;  %5926 = vmatmul.mubr.msk.bf16.gmra.mxu1 %vm304_vm1, %v3003_v30  ;;  %v3010_v42 = vrot.slane %v6808_v54, 2  ;;  %v4001_v30 = vrot.slane %v3999_v1, 2  ;;  %v3519_v54 = vrot.slane %v6829_v25, 2 }
  0xf2   : > { %v6798_v41 = vadd.f32 %v5729_v57, %v6637_v36  ;;  %5963 = vmatprep.mubr.msk.bf16.mxu0 %vm304_vm1, %v3512_v31  ;;  %573 = vst [vmem:[%s6695_s15 + $0x108] sm:$0xff] %v529_v40  ;;  %v1120_v51 = vadd.f32 %v5751_v43, %v6649_v46  ;;  %5929 = vmatprep.mubr.msk.bf16.mxu1 %vm304_vm1, %v3005_v37  ;;  %v6205_v46 = vld [vmem:[%s6296_s23 + $0x28] sm:$0xff]   ;;  %v4004_v31 = vrot.slane %v4002_v2, 3  ;;  %v4019_v37 = vshll.u32 %v6204_v5, 16 }
  0xf3   : > { %v461_v52 = vpop.f32.mrf.mxu0  ;;  %v939_v0 = vpop.f32.mrf.mxu1  ;;  %v4025_v38 = vshrl.u32 %v6205_v46, 16  ;;  %v4028_v40 = vshll.u32 %v6205_v46, 16  ;;  %v409_v57 = vadd.f32 %v6662_v56, %v6637_v36  ;;  %v6845_v58 = vor.u32 %v4012_v28, %v4009_v26  ;;  %v6848_v56 = vld [vmem:[%s6296_s23 + $0xa0] ss:$0 sps:$4 sm:$0x11]  }
  0xf4   : > { %v6811_v62 = vadd.f32 %v6637_v36, %v461_v52  ;;  %v1118_v43 = vadd.f32 %v939_v0, %v398_v19  ;;  %v4005_v2 = vor.u32 %v4004_v31, %v4001_v30  ;;  %v4018_v5 = vrot.slane %v4016_v35, 2  ;;  %v6206_v26 = vld [vmem:[%s6296_s23 + $0x10] sm:$0xf8]   ;;  %v6210_v31 = vld [vmem:[%s6296_s23 + $0x38] sm:$0xff]  }
  0xf5   : > { %v5730_v3 = vpop.f32.mrf.mxu0  ;;  %v5752_v9 = vpop.f32.mrf.mxu1  ;;  %v4021_v46 = vrot.slane %v4019_v37, 3  ;;  %v3011_v19 = vsel %vm2974_vm5, %v3008_v48, %v3010_v42  ;;  %v3520_v30 = vsel %vm2974_vm5, %v3517_v47, %v3519_v54  ;;  %v3521_v7 = vrot.slane %v6848_v56, 2 }
  0xf6   : > { %v6816_v8 = vadd.f32 %v5730_v3, %v6637_v36  ;;  %v1121_v59 = vadd.f32 %v5752_v9, %v409_v57  ;;  %v4014_v27 = vsel %vm3997_vm6, %v4005_v2, %v6845_v58 }
  0xf7   : > { %v464_v21 = vpop.f32.mrf.mxu0  ;;  %v942_v29 = vpop.f32.mrf.mxu1  ;;  %v4022_v42 = vor.u32 %v4021_v46, %v4018_v5 }
  0xf8   : > { %v6834_v16 = vadd.f32 %v6637_v36, %v464_v21 }
  0xf9   : > { %v5789_v63 = vpop.f32.mrf.mxu0  ;;  %5964 = vmatmul.mubr.msk.bf16.gmra.mxu0 %vm304_vm1, %v3514_v15  ;;  %v5755_v45 = vpop.f32.mrf.mxu1  ;;  %5930 = vmatmul.mubr.msk.bf16.gmra.mxu1 %vm304_vm1, %v3007_v13  ;;  %v4027_v13 = vrot.slane %v4025_v38, 2  ;;  %v4030_v15 = vrot.slane %v4028_v40, 3  ;;  %v425_v40 = vadd.f32 %v6698_v11, %v6637_v36  ;;  %v4043_v11 = vshrl.u32 %v6210_v31, 16 }
  0xfa   : > { %v6839_v50 = vadd.f32 %v5789_v63, %v1120_v51  ;;  %5967 = vmatprep.mubr.msk.bf16.mxu0 %vm304_vm1, %v3516_v24  ;;  %5933 = vmatprep.mubr.msk.bf16.mxu1 %vm304_vm1, %v3009_v18  ;;  %v401_v51 = vadd.f32 %v6637_v36, %v6669_v61  ;;  %v6853_v18 = vld [vmem:[%s6296_s23 + $0x18] sm:$0xff]   ;;  %v3518_v24 = vsel %vm2974_vm5, %v3515_v53, %v3517_v47 }
  0xfb   : > { %v1445_v52 = vpop.f32.mrf.mxu0  ;;  %v955_v0 = vpop.f32.mrf.mxu1  ;;  %v1124_v63 = vadd.f32 %v5755_v45, %v422_v20  ;;  %v6877_v37 = vor.u32 %v4030_v15, %v4027_v13  ;;  %v4644_v38 = vrot.slane %v6853_v18, 3  ;;  %v4643_v45 = vrot.slane %v6206_v26, 3 }
  0xfc   : > { %v1624_v1 = vadd.f32 %v1445_v52, %v1118_v43  ;;  %v1119_v21 = vadd.f32 %v942_v29, %v401_v51  ;;  %v6208_v29 = vld [vmem:[%s6296_s23 + $0x30] sm:$0xff]   ;;  %v1122_v12 = vadd.f32 %v955_v0, %v414_v33  ;;  %v3522_v20 = vsel %vm2974_vm5, %v3519_v54, %v3521_v7  ;;  %v6214_v7 = vld [vmem:[%s6296_s23 + $0x48] sm:$0xff]  }
  0xfd   : > { %v5790_v3 = vpop.f32.mrf.mxu0  ;;  %v5756_v61 = vpop.f32.mrf.mxu1  ;;  %v4034_v56 = vshrl.u32 %v6208_v29, 16  ;;  %v4037_v51 = vshll.u32 %v6208_v29, 16 }
  0xfe   : > { %1660 = vst [vmem:[%s6695_s15] sm:$0xff] %v1624_v1  ;;  %v1627_v9 = vadd.f32 %v5790_v3, %v1121_v59  ;;  %v417_v59 = vadd.f32 %v6637_v36, %v6704_v23  ;;  %v1125_v0 = vadd.f32 %v5756_v61, %v425_v40  ;;  %v4046_v3 = vshll.u32 %v6210_v31, 16  ;;  %v6209_v23 = vld [vmem:[%s6296_s23 + $0x20] sm:$0xff]  }
  0xff   : > { %v1448_v28 = vpop.f32.mrf.mxu0  ;;  %v958_v53 = vpop.f32.mrf.mxu1  ;;  %v4023_v36 = vsel %vm3997_vm6, %v6845_v58, %v4022_v42  ;;  %v4039_v26 = vrot.slane %v4037_v51, 3  ;;  %v4032_v58 = vsel %vm3997_vm6, %v4022_v42, %v6877_v37 }
 0x100   : > { %1663 = vst [vmem:[%s6695_s15 + $0x18] sm:$0xff] %v1627_v9  ;;  %v1625_v35 = vadd.f32 %v1448_v28, %v1119_v21  ;;  %v1123_v46 = vadd.f32 %v958_v53, %v417_v59  ;;  %v6212_v21 = vld [vmem:[%s6296_s23 + $0x40] sm:$0xff]   ;;  %v4645_v9 = vsel %vm4642_vm7, %v4643_v45, %v4644_v38  ;;  %v6904_v28 = vld [vmem:[%s6296_s23 + $0x28] sm:$0xff]   ;;  %v4064_v45 = vshll.u32 %v6214_v7, 16 }
 0x101   : > { %v5793_v48 = vpop.f32.mrf.mxu0  ;;  %5968 = vmatmul.mubr.msk.bf16.gmra.mxu0 %vm304_vm1, %v3518_v24  ;;  %v5759_v57 = vpop.f32.mrf.mxu1  ;;  %5934 = vmatmul.mubr.msk.bf16.gmra.mxu1 %vm304_vm1, %v3011_v19  ;;  %v4036_v24 = vrot.slane %v4034_v56, 2  ;;  %v4045_v19 = vrot.slane %v4043_v11, 2  ;;  %v4052_v53 = vshrl.u32 %v6212_v21, 16  ;;  %v4648_v42 = vrot.slane %v6904_v28, 3 }
 0x102   : > { %1661 = vst [vmem:[%s6695_s15 + $0x8] sm:$0xff] %v1625_v35  ;;  %v1630_v43 = vadd.f32 %v5793_v48, %v1124_v63  ;;  %5971 = vmatprep.mubr.msk.bf16.mxu0 %vm304_vm1, %v3520_v30  ;;  %v1128_v47 = vadd.f32 %v5759_v57, %v6720_v32  ;;  %5977 = vmatprep.mubr.msk.bf16.mxu1 %vm304_vm1, %v4014_v27  ;;  %v4048_v30 = vrot.slane %v4046_v3, 3  ;;  %v4646_v63 = vrot.slane %v6209_v23, 3 }
 0x103   : > { %v1461_v52 = vpop.f32.mrf.mxu0  ;;  %v971_v1 = vpop.f32.mrf.mxu1  ;;  %v4055_v35 = vshll.u32 %v6212_v21, 16  ;;  %v4054_v11 = vrot.slane %v4052_v53, 2  ;;  %v6220_v53 = vld [vmem:[%s6296_s23 + $0x60] sm:$0xff]  }
 0x104   : > { %1666 = vst [vmem:[%s6695_s15 + $0x30] sm:$0xff] %v1630_v43  ;;  %v1628_v2 = vadd.f32 %v1461_v52, %v1122_v12  ;;  %v1126_v5 = vadd.f32 %v971_v1, %v6729_v39  ;;  %v4049_v57 = vor.u32 %v4048_v30, %v4045_v19  ;;  %v4061_v43 = vshrl.u32 %v6214_v7, 16 }
 0x105   : > { %v5794_v32 = vpop.f32.mrf.mxu0  ;;  %v5760_v13 = vpop.f32.mrf.mxu1  ;;  %v4647_v51 = vsel %vm4642_vm7, %v4644_v38, %v4646_v63  ;;  %v4057_v59 = vrot.slane %v4055_v35, 3 }
 0x106   : > { %1664 = vst [vmem:[%s6695_s15 + $0x20] sm:$0xff] %v1628_v2  ;;  %v1631_v15 = vadd.f32 %v5794_v32, %v1125_v0  ;;  %v1129_v61 = vadd.f32 %v5760_v13, %v6735_v44  ;;  %v6213_v0 = vld [vmem:[%s6296_s23 + $0x30] sm:$0xff]   ;;  %v4063_v38 = vrot.slane %v4061_v43, 2  ;;  %v6962_v43 = vld [vmem:[%s6296_s23 + $0x48] sm:$0xff]  }
 0x107   : > { %v1464_v39 = vpop.f32.mrf.mxu0  ;;  %v974_v25 = vpop.f32.mrf.mxu1  ;;  %v6216_v32 = vld [vmem:[%s6296_s23 + $0x50] sm:$0xff]   ;;  %v4058_v21 = vor.u32 %v4057_v59, %v4054_v11 }
 0x108   : > { %1667 = vst [vmem:[%s6695_s15 + $0x38] sm:$0xff] %v1631_v15  ;;  %v1629_v54 = vadd.f32 %v1464_v39, %v1123_v46  ;;  %v1127_v44 = vadd.f32 %v974_v25, %v6748_v60  ;;  %v4040_v60 = vor.u32 %v4039_v26, %v4036_v24  ;;  %v4066_v15 = vrot.slane %v4064_v45, 3 }
 0x109   : > { %v5797_v29 = vpop.f32.mrf.mxu0  ;;  %5972 = vmatmul.mubr.msk.bf16.gmra.mxu0 %vm304_vm1, %v3522_v20  ;;  %v5763_v31 = vpop.f32.mrf.mxu1  ;;  %5978 = vmatmul.mubr.msk.bf16.vlgmr.msra.gmra.mxu1 %vm304_vm1, %v4023_v36  ;;  %v6218_v20 = vld [vmem:[%s6296_s23 + $0x58] sm:$0xff]   ;;  %v4070_v24 = vshrl.u32 %v6216_v32, 16  ;;  %v4073_v26 = vshll.u32 %v6216_v32, 16 }
 0x10a   : > { %1665 = vst [vmem:[%s6695_s15 + $0x28] sm:$0xff] %v1629_v54  ;;  %v6913_v33 = vadd.f32 %v5797_v29, %v1128_v47  ;;  %6015 = vmatprep.mubr.msk.bf16.mxu0 %vm304_vm1, %v4645_v9  ;;  %v1132_v27 = vadd.f32 %v5763_v31, %v6758_v4  ;;  %5981 = vmatprep.mubr.msk.bf16.mxu1 %vm304_vm1, %v4032_v58  ;;  %v4079_v58 = vshrl.u32 %v6218_v20, 16  ;;  %v4082_v19 = vshll.u32 %v6218_v20, 16 }
 0x10b   : > { %v1477_v48 = vpop.f32.mrf.mxu0  ;;  %v987_v40 = vpop.f32.mrf.mxu1  ;;  %v4041_v3 = vsel %vm3997_vm6, %v6877_v37, %v4040_v60  ;;  %v4050_v18 = vsel %vm3997_vm6, %v4040_v60, %v4049_v57  ;;  %v4067_v54 = vor.u32 %v4066_v15, %v4063_v38  ;;  %v4059_v29 = vsel %vm3997_vm6, %v4049_v57, %v4058_v21 }
 0x10c   : > { %v6920_v12 = vadd.f32 %v1477_v48, %v1126_v5  ;;  %v1130_v47 = vadd.f32 %v987_v40, %v6767_v17  ;;  %v4649_v17 = vsel %vm4642_vm7, %v4646_v63, %v4648_v42  ;;  %v6934_v5 = vld [vmem:[%s6296_s23 + $0x38] sm:$0xff]   ;;  %v6217_v63 = vld [vmem:[%s6296_s23 + $0x40] sm:$0xff]   ;;  %v4072_v60 = vrot.slane %v4070_v24, 2 }
 0x10d   : > { %v5798_v52 = vpop.f32.mrf.mxu0  ;;  %v5764_v56 = vpop.f32.mrf.mxu1  ;;  %v4075_v40 = vrot.slane %v4073_v26, 3  ;;  %v4084_v57 = vrot.slane %v4082_v19, 3  ;;  %v4654_v59 = vrot.slane %v6217_v63, 3 }
 0x10e   : > { %v6923_v4 = vadd.f32 %v5798_v52, %v1129_v61  ;;  %v1133_v1 = vadd.f32 %v5764_v56, %v6773_v22  ;;  %v4650_v61 = vrot.slane %v6213_v0, 3  ;;  %v4081_v52 = vrot.slane %v4079_v58, 2  ;;  %v6222_v56 = vld [vmem:[%s6296_s23 + $0x68] sm:$0xff]  }
 0x10f   : > { %v1480_v2 = vpop.f32.mrf.mxu0  ;;  %v990_v46 = vpop.f32.mrf.mxu1  ;;  %v4088_v0 = vshrl.u32 %v6220_v53, 16  ;;  %v4100_v38 = vshll.u32 %v6222_v56, 16 }
 0x110   : > { %v6937_v13 = vadd.f32 %v1480_v2, %v1127_v44  ;;  %v1131_v36 = vadd.f32 %v990_v46, %v6790_v34  ;;  %v4652_v34 = vrot.slane %v6934_v5, 3  ;;  %v4651_v31 = vsel %vm4642_vm7, %v4648_v42, %v4650_v61 }
 0x111   : > { %v5801_v22 = vpop.f32.mrf.mxu0  ;;  %6016 = vmatmul.mubr.msk.bf16.vlgmr.msra.gmra.mxu0 %vm304_vm1, %v4647_v51  ;;  %v5767_v23 = vpop.f32.mrf.mxu1  ;;  %5982 = vmatmul.mubr.msk.bf16.gmra.mxu1 %vm304_vm1, %v4041_v3  ;;  %v4085_v46 = vor.u32 %v4084_v57, %v4081_v52 }
 0x112   : > { %v6943_v37 = vadd.f32 %v5801_v22, %v1132_v27  ;;  %6019 = vmatprep.mubr.msk.bf16.mxu0 %vm304_vm1, %v4649_v17  ;;  %v1136_v39 = vadd.f32 %v5767_v23, %v6798_v41  ;;  %5985 = vmatprep.mubr.msk.bf16.mxu1 %vm304_vm1, %v4050_v18  ;;  %v4653_v48 = vsel %vm4642_vm7, %v4650_v61, %v4652_v34  ;;  %v4656_v17 = vrot.slane %v6962_v43, 3  ;;  %v6221_v61 = vld [vmem:[%s6296_s23 + $0x50] sm:$0xff]  }
 0x113   : > { %v1493_v9 = vpop.f32.mrf.mxu0  ;;  %v1003_v28 = vpop.f32.mrf.mxu1  ;;  %v4097_v18 = vshrl.u32 %v6222_v56, 16  ;;  %v4655_v22 = vsel %vm4642_vm7, %v4652_v34, %v4654_v59  ;;  %v4090_v23 = vrot.slane %v4088_v0, 2  ;;  %v4102_v34 = vrot.slane %v4100_v38, 3  ;;  %v6225_v56 = vld [vmem:[%s6296_s23 + $0x60] sm:$0xff]  }
 0x114   : > { %v6950_v25 = vadd.f32 %v1493_v9, %v1130_v47  ;;  %v1134_v30 = vadd.f32 %v1003_v28, %v6811_v62  ;;  %v4068_v47 = vsel %vm3997_vm6, %v4058_v21, %v4067_v54  ;;  %v4657_v26 = vsel %vm4642_vm7, %v4654_v59, %v4656_v17  ;;  %v6988_v28 = vld [vmem:[%s6296_s23 + $0x58] sm:$0xff]  }
 0x115   : > { %v5802_v7 = vpop.f32.mrf.mxu0  ;;  %v5768_v41 = vpop.f32.mrf.mxu1 }
 0x116   : > { %v6953_v44 = vadd.f32 %v5802_v7, %v1133_v1  ;;  %v1137_v35 = vadd.f32 %v5768_v41, %v6816_v8  ;;  %v4091_v1 = vshll.u32 %v6220_v53, 16  ;;  %v4099_v7 = vrot.slane %v4097_v18, 2  ;;  %v6226_v41 = vld [vmem:[%s6296_s23 + $0x78] sm:$0xff]  }
 0x117   : > { %v1496_v27 = vpop.f32.mrf.mxu0  ;;  %v1006_v62 = vpop.f32.mrf.mxu1  ;;  %v4658_v53 = vrot.slane %v6221_v61, 3  ;;  %v4118_v52 = vshll.u32 %v6226_v41, 16 }
 0x118   : > { %v6964_v45 = vadd.f32 %v1496_v27, %v1131_v36  ;;  %v1135_v42 = vadd.f32 %v1006_v62, %v6834_v16  ;;  %v4076_v16 = vor.u32 %v4075_v40, %v4072_v60  ;;  %v4093_v21 = vrot.slane %v4091_v1, 3 }
 0x119   : > { %v5805_v51 = vpop.f32.mrf.mxu0  ;;  %6020 = vmatmul.mubr.msk.bf16.gmra.mxu0 %vm304_vm1, %v4651_v31  ;;  %v5771_v8 = vpop.f32.mrf.mxu1  ;;  %5986 = vmatmul.mubr.msk.bf16.gmra.mxu1 %vm304_vm1, %v4059_v29  ;;  %v4103_v62 = vor.u32 %v4102_v34, %v4099_v7 }
 0x11a   : > { %v6970_v11 = vadd.f32 %v5805_v51, %v1136_v39  ;;  %6023 = vmatprep.mubr.msk.bf16.mxu0 %vm304_vm1, %v4653_v48  ;;  %v1140_v2 = vadd.f32 %v5771_v8, %v6654_v49  ;;  %5989 = vmatprep.mubr.msk.bf16.mxu1 %vm304_vm1, %v4068_v47  ;;  %v4077_v24 = vsel %vm3997_vm6, %v4067_v54, %v4076_v16  ;;  %v4115_v47 = vshrl.u32 %v6226_v41, 16  ;;  %v6228_v8 = vld [vmem:[%s6296_s23 + $0x80] sm:$0xff]  }
 0x11b   : > { %v1509_v3 = vpop.f32.mrf.mxu0  ;;  %v1019_v5 = vpop.f32.mrf.mxu1  ;;  %v4094_v63 = vor.u32 %v4093_v21, %v4090_v23  ;;  %v4659_v51 = vsel %vm4642_vm7, %v4656_v17, %v4658_v53  ;;  %v1106_v17 = vld [vmem:[%s6695_s15 + $0xc0] sm:$0xff] }
 0x11c   : > { %v6977_v32 = vadd.f32 %v1509_v3, %v1134_v30  ;;  %v1138_v15 = vadd.f32 %v1019_v5, %v6660_v55  ;;  %v6224_v55 = vld [vmem:[%s6296_s23 + $0x70] sm:$0xff]   ;;  %v4086_v30 = vsel %vm3997_vm6, %v4076_v16, %v4085_v46  ;;  %v7014_v16 = vld [vmem:[%s6296_s23 + $0x68] sm:$0xff]  }
 0x11d   : > { %v5806_v20 = vpop.f32.mrf.mxu0  ;;  %v5772_v36 = vpop.f32.mrf.mxu1  ;;  %v4106_v48 = vshrl.u32 %v6224_v55, 16  ;;  %v4109_v60 = vshll.u32 %v6224_v55, 16  ;;  %v4095_v0 = vsel %vm3997_vm6, %v4085_v46, %v4094_v63  ;;  %v6230_v5 = vld [vmem:[%s6296_s23 + $0x88] sm:$0xff]   ;;  %v4662_v46 = vrot.slane %v6225_v56, 3 }
 0x11e   : > { %v6980_v49 = vadd.f32 %v5806_v20, %v1137_v35  ;;  %v1141_v39 = vadd.f32 %v5772_v36, %v6667_v14  ;;  %v4117_v20 = vrot.slane %v4115_v47, 2  ;;  %v4120_v36 = vrot.slane %v4118_v52, 3  ;;  %v7037_v47 = vld [vmem:[%s6296_s23 + $0x78] sm:$0xff]   ;;  %v1112_v52 = vld [vmem:[%s6695_s15 + $0xf0] sm:$0xff] }
 0x11f   : > { %v1512_v9 = vpop.f32.mrf.mxu0  ;;  %v1022_v58 = vpop.f32.mrf.mxu1  ;;  %v4111_v3 = vrot.slane %v4109_v60, 3  ;;  %v4664_v55 = vrot.slane %v7014_v16, 3  ;;  %v1110_v16 = vld [vmem:[%s6695_s15 + $0xe0] sm:$0xff] }
 0x120   : > { %v6991_v19 = vadd.f32 %v1512_v9, %v1135_v42  ;;  %v1139_v29 = vadd.f32 %v1022_v58, %v6679_v6  ;;  %v4660_v6 = vrot.slane %v6988_v28, 3  ;;  %v4127_v9 = vshll.u32 %v6228_v8, 16 }
 0x121   : > { %v5809_v31 = vpop.f32.mrf.mxu0  ;;  %6024 = vmatmul.mubr.msk.bf16.gmra.mxu0 %vm304_vm1, %v4655_v22  ;;  %v5775_v14 = vpop.f32.mrf.mxu1  ;;  %5990 = vmatmul.mubr.msk.bf16.gmra.mxu1 %vm304_vm1, %v4077_v24  ;;  %v1109_v24 = vld [vmem:[%s6695_s15 + $0xd8] sm:$0xff]  ;;  %v4133_v58 = vshrl.u32 %v6230_v5, 16 }
 0x122   : > { %v6997_v54 = vadd.f32 %v5809_v31, %v1140_v2  ;;  %6027 = vmatprep.mubr.msk.bf16.mxu0 %vm304_vm1, %v4657_v26  ;;  %v1144_v35 = vadd.f32 %v5775_v14, %v6687_v10  ;;  %5993 = vmatprep.mubr.msk.bf16.mxu1 %vm304_vm1, %v4086_v30  ;;  %v4661_v1 = vsel %vm4642_vm7, %v4658_v53, %v4660_v6  ;;  %v4108_v2 = vrot.slane %v4106_v48, 2  ;;  %v1107_v31 = vld [vmem:[%s6695_s15 + $0xc8] sm:$0xff]  ;;  %v6229_v53 = vld [vmem:[%s6296_s23 + $0x70] sm:$0xff]  }
 0x123   : > { %v1525_v27 = vpop.f32.mrf.mxu0  ;;  %v1035_v40 = vpop.f32.mrf.mxu1  ;;  %v4136_v30 = vshll.u32 %v6230_v5, 16 }
 0x124   : > { %v7004_v43 = vadd.f32 %v1525_v27, %v1138_v15  ;;  %v4104_v15 = vsel %vm3997_vm6, %v4094_v63, %v4103_v62  ;;  %v1142_v23 = vadd.f32 %v1106_v17, %v1035_v40  ;;  %v4112_v28 = vor.u32 %v4111_v3, %v4108_v2  ;;  %v6234_v3 = vld [vmem:[%s6296_s23 + $0x98] sm:$0xff]  }
 0x125   : > { %v5810_v57 = vpop.f32.mrf.mxu0  ;;  %v5776_v42 = vpop.f32.mrf.mxu1  ;;  %v4663_v63 = vsel %vm4642_vm7, %v4660_v6, %v4662_v46  ;;  %v4129_v40 = vrot.slane %v4127_v9, 3  ;;  %v6232_v6 = vld [vmem:[%s6296_s23 + $0x90] sm:$0xff]   ;;  %v4668_v17 = vrot.slane %v7037_v47, 3 }
 0x126   : > { %v7007_v10 = vadd.f32 %v5810_v57, %v1141_v39  ;;  %v4124_v39 = vshrl.u32 %v6228_v8, 16  ;;  %v1145_v7 = vadd.f32 %v5776_v42, %v1109_v24  ;;  %v4113_v56 = vsel %vm3997_vm6, %v4103_v62, %v4112_v28  ;;  %v1116_v47 = vld [vmem:[%s6695_s15 + $0x110] sm:$0xff] }
 0x127   : > { %v1528_v59 = vpop.f32.mrf.mxu0  ;;  %v1038_v18 = vpop.f32.mrf.mxu1  ;;  %v4665_v42 = vsel %vm4642_vm7, %v4662_v46, %v4664_v55  ;;  %v4138_v8 = vrot.slane %v4136_v30, 3  ;;  %v1111_v30 = vld [vmem:[%s6695_s15 + $0xe8] sm:$0xff] }
 0x128   : > { %v7017_v38 = vadd.f32 %v1528_v59, %v1139_v29  ;;  %v4121_v29 = vor.u32 %v4120_v36, %v4117_v20  ;;  %v4126_v60 = vrot.slane %v4124_v39, 2  ;;  %v4145_v39 = vshll.u32 %v6232_v6, 16 }
 0x129   : > { %v5813_v22 = vpop.f32.mrf.mxu0  ;;  %6028 = vmatmul.mubr.msk.bf16.gmra.mxu0 %vm304_vm1, %v4659_v51  ;;  %v5779_v21 = vpop.f32.mrf.mxu1  ;;  %5994 = vmatmul.mubr.msk.bf16.gmra.mxu1 %vm304_vm1, %v4095_v0  ;;  %v4135_v51 = vrot.slane %v4133_v58, 2  ;;  %v4154_v58 = vshll.u32 %v6234_v3, 16 }
 0x12a   : > { %v7022_v61 = vadd.f32 %v5813_v22, %v1144_v35  ;;  %6031 = vmatprep.mubr.msk.bf16.mxu0 %vm304_vm1, %v4661_v1  ;;  %5997 = vmatprep.mubr.msk.bf16.mxu1 %vm304_vm1, %v4104_v15  ;;  %v1143_v35 = vadd.f32 %v1107_v31, %v1038_v18  ;;  %v1148_v59 = vadd.f32 %v5779_v21, %v1112_v52  ;;  %v4666_v18 = vrot.slane %v6229_v53, 3  ;;  %v1113_v22 = vld [vmem:[%s6695_s15 + $0xf8] sm:$0xff] }
 0x12b   : > { %v1541_v26 = vpop.f32.mrf.mxu0  ;;  %v1051_v34 = vpop.f32.mrf.mxu1  ;;  %v4122_v2 = vsel %vm3997_vm6, %v4112_v28, %v4121_v29  ;;  %v4130_v36 = vor.u32 %v4129_v40, %v4126_v60  ;;  %v4142_v21 = vshrl.u32 %v6232_v6, 16  ;;  %v4151_v28 = vshrl.u32 %v6234_v3, 16  ;;  %v6233_v60 = vld [vmem:[%s6296_s23 + $0x80] sm:$0xff]   ;;  %v7067_v40 = vld [vmem:[%s6296_s23 + $0x88] sm:$0xff]  }
 0x12c   : > { %v7029_v41 = vadd.f32 %v1541_v26, %v1142_v23  ;;  %v1146_v15 = vadd.f32 %v1110_v16, %v1051_v34  ;;  %v4139_v23 = vor.u32 %v4138_v8, %v4135_v51  ;;  %v4667_v34 = vsel %vm4642_vm7, %v4664_v55, %v4666_v18  ;;  %v6236_v51 = vld [vmem:[%s6296_s23 + $0xa0] ss:$0 sps:$4 sm:$0x33]  }
 0x12d   : > { %v5814_v14 = vpop.f32.mrf.mxu0  ;;  %v5780_v27 = vpop.f32.mrf.mxu1  ;;  %v4144_v55 = vrot.slane %v4142_v21, 2  ;;  %v4160_v21 = vshrl.u32 %v6236_v51, 16 }
 0x12e   : > { %v7034_v48 = vadd.f32 %v5814_v14, %v1145_v7  ;;  %v1149_v9 = vadd.f32 %v5780_v27, %v1113_v22  ;;  %v4669_v27 = vsel %vm4642_vm7, %v4666_v18, %v4668_v17 }
 0x12f   : > { %v1544_v57 = vpop.f32.mrf.mxu0  ;;  %v1054_v0 = vpop.f32.mrf.mxu1 }
 0x130   : > { %v7043_v1 = vadd.f32 %v1544_v57, %v1143_v35  ;;  %v1147_v31 = vadd.f32 %v1111_v30, %v1054_v0  ;;  %v4131_v35 = vsel %vm3997_vm6, %v4121_v29, %v4130_v36  ;;  %v4153_v29 = vrot.slane %v4151_v28, 2 }
 0x131   : > { %v5817_v5 = vpop.f32.mrf.mxu0  ;;  %6032 = vmatmul.mubr.msk.bf16.gmra.mxu0 %vm304_vm1, %v4663_v63  ;;  %v5783_v62 = vpop.f32.mrf.mxu1  ;;  %5998 = vmatmul.mubr.msk.bf16.gmra.mxu1 %vm304_vm1, %v4113_v56  ;;  %v1117_v63 = vld [vmem:[%s6695_s15 + $0x118] sm:$0x3f]  ;;  %v4140_v56 = vsel %vm3997_vm6, %v4130_v36, %v4139_v23  ;;  %v4156_v0 = vrot.slane %v4154_v58, 3  ;;  %v1115_v58 = vld [vmem:[%s6695_s15 + $0x108] sm:$0xff] }
 0x132   : > { %v7049_v20 = vadd.f32 %v5817_v5, %v1148_v59  ;;  %6035 = vmatprep.mubr.msk.bf16.mxu0 %vm304_vm1, %v4665_v42  ;;  %6001 = vmatprep.mubr.msk.bf16.mxu1 %vm304_vm1, %v4122_v2  ;;  %v4147_v42 = vrot.slane %v4145_v39, 3  ;;  %v1152_v8 = vadd.f32 %v5783_v62, %v1116_v47  ;;  %v1114_v2 = vld [vmem:[%s6695_s15 + $0x100] sm:$0xff]  ;;  %v4672_v62 = vrot.slane %v7067_v40, 3  ;;  %v6238_v40 = vld [vmem:[%s6296_s23 + $0x98] sm:$0xff]  }
 0x133   : > { %v1557_v46 = vpop.f32.mrf.mxu0  ;;  %v1067_v24 = vpop.f32.mrf.mxu1  ;;  %v4163_v39 = vshll.u32 %v6236_v51, 16  ;;  %v4157_v28 = vor.u32 %v4156_v0, %v4153_v29  ;;  %v2096_v29 = vld [vmem:[%s6695_s15 + $0x18] sm:$0xff] }
 0x134   : > { %v7056_v26 = vadd.f32 %v1557_v46, %v1146_v15  ;;  %v1150_v16 = vadd.f32 %v1114_v2, %v1067_v24  ;;  %v4670_v15 = vrot.slane %v6233_v60, 3  ;;  %v4148_v46 = vor.u32 %v4147_v42, %v4144_v55  ;;  %v2093_v55 = vld [vmem:[%s6695_s15] sm:$0xff] }
 0x135   : > { %v5818_v7 = vpop.f32.mrf.mxu0  ;;  %v5784_v14 = vpop.f32.mrf.mxu1  ;;  %v4165_v60 = vrot.slane %v4163_v39, 3 }
 0x136   : > { %v7061_v53 = vadd.f32 %v5818_v7, %v1149_v9  ;;  %v1153_v52 = vadd.f32 %v5784_v14, %v1117_v63  ;;  %v4149_v63 = vsel %vm3997_vm6, %v4139_v23, %v4148_v46 }
 0x137   : > { %v1560_v57 = vpop.f32.mrf.mxu0  ;;  %v1070_v6 = vpop.f32.mrf.mxu1 }
 0x138   : > { %v7072_v59 = vadd.f32 %v1560_v57, %v1147_v31  ;;  %1189 = vst [vmem:[%s6695_s15 + $0x118] sm:$0x3f] %v1153_v52  ;;  %v1151_v7 = vadd.f32 %v1115_v58, %v1070_v6  ;;  %v4671_v31 = vsel %vm4642_vm7, %v4668_v17, %v4670_v15  ;;  %v6239_v58 = vld [vmem:[%s6296_s23 + $0xa0] ss:$0 sps:$4 sm:$0x33]  }
 0x139   : > { %v5821_v3 = vpop.f32.mrf.mxu0  ;;  %6036 = vmatmul.mubr.msk.bf16.gmra.mxu0 %vm304_vm1, %v4667_v34  ;;  %v5827_v18 = vpop.f32.mrf.mxu1  ;;  %6002 = vmatmul.mubr.msk.bf16.gmra.mxu1 %vm304_vm1, %v4131_v35  ;;  %v4673_v35 = vsel %vm4642_vm7, %v4670_v15, %v4672_v62 }
 0x13a   : > { %v7077_v5 = vadd.f32 %v5821_v3, %v1152_v8  ;;  %6039 = vmatprep.mubr.msk.bf16.mxu0 %vm304_vm1, %v4669_v27  ;;  %v2131_v36 = vadd.f32 %v5827_v18, %v6839_v50  ;;  %6005 = vmatprep.mubr.msk.bf16.mxu1 %vm304_vm1, %v4140_v56  ;;  %v6237_v50 = vld [vmem:[%s6296_s23 + $0x90] sm:$0xff]   ;;  %v4162_v27 = vrot.slane %v4160_v21, 2  ;;  %v4158_v56 = vsel %vm3997_vm6, %v4148_v46, %v4157_v28 }
 0x13b   : > { %v1573_v22 = vpop.f32.mrf.mxu0  ;;  %v1950_v24 = vpop.f32.mrf.mxu1  ;;  %v4674_v6 = vrot.slane %v6237_v50, 3  ;;  %v4676_v3 = vrot.slane %v6238_v40, 3 }
 0x13c   : > { %v7084_v9 = vadd.f32 %v1573_v22, %v1150_v16  ;;  %v2129_v23 = vadd.f32 %v2093_v55, %v1950_v24  ;;  %v4166_v2 = vor.u32 %v4165_v60, %v4162_v27 }
 0x13d   : > { %v5822_v30 = vpop.f32.mrf.mxu0  ;;  %v5828_v34 = vpop.f32.mrf.mxu1  ;;  %v4675_v24 = vsel %vm4642_vm7, %v4672_v62, %v4674_v6 }
 0x13e   : > { %v2132_v16 = vadd.f32 %v5828_v34, %v2096_v29  ;;  %v4677_v34 = vsel %vm4642_vm7, %v4674_v6, %v4676_v3 }
 0x13f   : > { %v1576_v14 = vpop.f32.mrf.mxu0  ;;  %v1623_v47 = vld [vmem:[%s6695_s15 + $0x118] sm:$0x3f]  ;;  %v1953_v57 = vpop.f32.mrf.mxu1 }
 0x140   : > { %v7093_v52 = vadd.f32 %v1576_v14, %v1151_v7  ;;  %v1659_v42 = vadd.f32 %v5822_v30, %v1623_v47  ;;  %v2099_v30 = vld [vmem:[%s6695_s15 + $0x30] sm:$0xff]  ;;  %v2100_v47 = vld [vmem:[%s6695_s15 + $0x38] sm:$0xff] }
 0x141   : > { %v5865_v17 = vpop.f32.mrf.mxu0  ;;  %6040 = vmatmul.mubr.msk.bf16.gmra.mxu0 %vm304_vm1, %v4671_v31  ;;  %v5831_v51 = vpop.f32.mrf.mxu1  ;;  %6006 = vmatmul.mubr.msk.bf16.gmra.mxu1 %vm304_vm1, %v4149_v63  ;;  %v4167_v31 = vsel %vm3997_vm6, %v4157_v28, %v4166_v2  ;;  %v4678_v28 = vrot.slane %v6239_v58, 3 }
 0x142   : > { %v7098_v8 = vadd.f32 %v5865_v17, %v2131_v36  ;;  %6043 = vmatprep.mubr.msk.bf16.mxu0 %vm304_vm1, %v4673_v35  ;;  %1695 = vst [vmem:[%s6695_s15 + $0x118] sm:$0x3f] %v1659_v42  ;;  %6009 = vmatprep.mubr.msk.bf16.mxu1 %vm304_vm1, %v4158_v56  ;;  %v2094_v36 = vld [vmem:[%s6695_s15 + $0x8] sm:$0xff]  ;;  %v2135_v50 = vadd.f32 %v5831_v51, %v2099_v30  ;;  %v2097_v35 = vld [vmem:[%s6695_s15 + $0x20] sm:$0xff] }
 0x143   : > { %v2591_v0 = vpop.f32.mrf.mxu0  ;;  %v1966_v18 = vpop.f32.mrf.mxu1  ;;  %v2130_v46 = vadd.f32 %v2094_v36, %v1953_v57 }
 0x144   : > { %v7105_v15 = vadd.f32 %v2591_v0, %v2129_v23  ;;  %v2133_v60 = vadd.f32 %v2097_v35, %v1966_v18  ;;  %v2098_v23 = vld [vmem:[%s6695_s15 + $0x28] sm:$0xff] }
 0x145   : > { %v5866_v22 = vpop.f32.mrf.mxu0  ;;  %v5832_v21 = vpop.f32.mrf.mxu1 }
 0x146   : > { %v7108_v39 = vadd.f32 %v5866_v22, %v2132_v16  ;;  %v2136_v55 = vadd.f32 %v5832_v21, %v2100_v47  ;;  %v4679_v16 = vsel %vm4642_vm7, %v4676_v3, %v4678_v28 }
 0x147   : > { %v2594_v7 = vpop.f32.mrf.mxu0  ;;  %v1969_v14 = vpop.f32.mrf.mxu1 }
 0x148   : > { %v7115_v63 = vadd.f32 %v2594_v7, %v2130_v46  ;;  %v2134_v29 = vadd.f32 %v2098_v23, %v1969_v14 }
 0x149   : > { %v5869_v27 = vpop.f32.mrf.mxu0  ;;  %6044 = vmatmul.mubr.msk.bf16.gmra.mxu0 %vm304_vm1, %v4675_v24  ;;  %v5835_v40 = vpop.f32.mrf.mxu1  ;;  %6010 = vmatmul.mubr.msk.bf16.gmra.mxu1 %vm304_vm1, %v4167_v31 }
 0x14a   : > { %v7119_v62 = vadd.f32 %v5869_v27, %v2135_v50  ;;  %6047 = vmatprep.mubr.msk.bf16.mxu0 %vm304_vm1, %v4677_v34  ;;  %v2139_v57 = vadd.f32 %v5835_v40, %v6913_v33 }
 0x14b   : > { %v2607_v56 = vpop.f32.mrf.mxu0  ;;  %v1982_v42 = vpop.f32.mrf.mxu1 }
 0x14c   : > { %v7125_v17 = vadd.f32 %v2607_v56, %v2133_v60  ;;  %v2137_v51 = vadd.f32 %v1982_v42, %v6920_v12 }
 0x14d   : > { %v5870_v6 = vpop.f32.mrf.mxu0  ;;  %v5836_v0 = vpop.f32.mrf.mxu1 }
 0x14e   : > { %v7129_v2 = vadd.f32 %v5870_v6, %v2136_v55  ;;  %v2140_v18 = vadd.f32 %v5836_v0, %v6923_v4 }
 0x14f   : > { %v2610_v36 = vpop.f32.mrf.mxu0  ;;  %v1985_v22 = vpop.f32.mrf.mxu1 }
 0x150   : > { %v7133_v33 = vadd.f32 %v2610_v36, %v2134_v29  ;;  %v2138_v46 = vadd.f32 %v1985_v22, %v6937_v13 }
 0x151   : > { %v5873_v21 = vpop.f32.mrf.mxu0  ;;  %6048 = vmatmul.mubr.msk.bf16.gmra.mxu0 %vm304_vm1, %v4679_v16  ;;  %v5839_v24 = vpop.f32.mrf.mxu1 }
 0x152   : > { %v7137_v12 = vadd.f32 %v5873_v21, %v2139_v57  ;;  %v2143_v58 = vadd.f32 %v5839_v24, %v6943_v37 }
 0x153   : > { %v2623_v30 = vpop.f32.mrf.mxu0  ;;  %v1998_v7 = vpop.f32.mrf.mxu1 }
 0x154   : > { %v7140_v31 = vadd.f32 %v2623_v30, %v2137_v51  ;;  %v2141_v4 = vadd.f32 %v1998_v7, %v6950_v25 }
 0x155   : > { %v5874_v3 = vpop.f32.mrf.mxu0  ;;  %v5840_v34 = vpop.f32.mrf.mxu1 }
 0x156   : > { %v7143_v50 = vadd.f32 %v5874_v3, %v2140_v18  ;;  %v2144_v13 = vadd.f32 %v5840_v34, %v6953_v44 }
 0x157   : > { %v2626_v14 = vpop.f32.mrf.mxu0  ;;  %v2001_v35 = vpop.f32.mrf.mxu1 }
 0x158   : > { %v7146_v27 = vadd.f32 %v2626_v14, %v2138_v46  ;;  %v2142_v60 = vadd.f32 %v2001_v35, %v6964_v45 }
 0x159   : > { %v5877_v40 = vpop.f32.mrf.mxu0  ;;  %v5843_v37 = vpop.f32.mrf.mxu1 }
 0x15a   : > { %v7149_v28 = vadd.f32 %v5877_v40, %v2143_v58  ;;  %v2147_v47 = vadd.f32 %v5843_v37, %v6970_v11 }
 0x15b   : > { %v2639_v57 = vpop.f32.mrf.mxu0  ;;  %v2014_v25 = vpop.f32.mrf.mxu1 }
 0x15c   : > { %v7152_v56 = vadd.f32 %v2639_v57, %v2141_v4  ;;  %v2145_v55 = vadd.f32 %v2014_v25, %v6977_v32 }
 0x15d   : > { %v5878_v42 = vpop.f32.mrf.mxu0  ;;  %v5844_v44 = vpop.f32.mrf.mxu1 }
 0x15e   : > { %v7155_v23 = vadd.f32 %v5878_v42, %v2144_v13  ;;  %v2148_v51 = vadd.f32 %v5844_v44, %v6980_v49 }
 0x15f   : > { %v2642_v6 = vpop.f32.mrf.mxu0  ;;  %v2017_v45 = vpop.f32.mrf.mxu1 }
 0x160   : > { %v7158_v29 = vadd.f32 %v2642_v6, %v2142_v60  ;;  %v2146_v0 = vadd.f32 %v2017_v45, %v6991_v19 }
 0x161   : > { %v5881_v16 = vpop.f32.mrf.mxu0  ;;  %v5847_v11 = vpop.f32.mrf.mxu1 }
 0x162   : > { %v7161_v18 = vadd.f32 %v5881_v16, %v2147_v47  ;;  %v2151_v36 = vadd.f32 %v5847_v11, %v6997_v54 }
 0x163   : > { %v2655_v22 = vpop.f32.mrf.mxu0  ;;  %v2030_v32 = vpop.f32.mrf.mxu1 }
 0x164   : > { %v7164_v46 = vadd.f32 %v2655_v22, %v2145_v55  ;;  %v2149_v21 = vadd.f32 %v2030_v32, %v7004_v43 }
 0x165   : > { %v5882_v24 = vpop.f32.mrf.mxu0  ;;  %v5848_v49 = vpop.f32.mrf.mxu1 }
 0x166   : > { %v7167_v58 = vadd.f32 %v5882_v24, %v2148_v51  ;;  %v2152_v30 = vadd.f32 %v5848_v49, %v7007_v10 }
 0x167   : > { %v2658_v7 = vpop.f32.mrf.mxu0  ;;  %v2033_v19 = vpop.f32.mrf.mxu1 }
 0x168   : > { %v7170_v4 = vadd.f32 %v2658_v7, %v2146_v0  ;;  %v2150_v3 = vadd.f32 %v2033_v19, %v7017_v38 }
 0x169   : > { %v5885_v34 = vpop.f32.mrf.mxu0  ;;  %v5851_v54 = vpop.f32.mrf.mxu1 }
 0x16a   : > { %v7173_v13 = vadd.f32 %v5885_v34, %v2151_v36  ;;  %v2155_v14 = vadd.f32 %v5851_v54, %v7022_v61 }
 0x16b   : > { %v2671_v35 = vpop.f32.mrf.mxu0  ;;  %v2046_v43 = vpop.f32.mrf.mxu1 }
 0x16c   : > { %v7176_v60 = vadd.f32 %v2671_v35, %v2149_v21  ;;  %v2153_v40 = vadd.f32 %v2046_v43, %v7029_v41 }
 0x16d   : > { %v5886_v37 = vpop.f32.mrf.mxu0  ;;  %v5852_v10 = vpop.f32.mrf.mxu1 }
 0x16e   : > { %v7179_v47 = vadd.f32 %v5886_v37, %v2152_v30  ;;  %v2156_v57 = vadd.f32 %v5852_v10, %v7034_v48 }
 0x16f   : > { %v2674_v25 = vpop.f32.mrf.mxu0  ;;  %v2049_v38 = vpop.f32.mrf.mxu1 }
 0x170   : > { %v7182_v55 = vadd.f32 %v2674_v25, %v2150_v3  ;;  %v2154_v42 = vadd.f32 %v2049_v38, %v7043_v1 }
 0x171   : > { %v5889_v44 = vpop.f32.mrf.mxu0  ;;  %v5855_v61 = vpop.f32.mrf.mxu1 }
 0x172   : > { %v7185_v51 = vadd.f32 %v5889_v44, %v2155_v14  ;;  %v2159_v6 = vadd.f32 %v5855_v61, %v7049_v20  ;;  %v2128_v14 = vld [vmem:[%s6695_s15 + $0x118] sm:$0x3f] }
 0x173   : > { %v2687_v45 = vpop.f32.mrf.mxu0  ;;  %v2062_v41 = vpop.f32.mrf.mxu1 }
 0x174   : > { %v7188_v0 = vadd.f32 %v2687_v45, %v2153_v40  ;;  %v2157_v16 = vadd.f32 %v2062_v41, %v7056_v26 }
 0x175   : > { %v5890_v11 = vpop.f32.mrf.mxu0  ;;  %v5856_v48 = vpop.f32.mrf.mxu1 }
 0x176   : > { %v7191_v36 = vadd.f32 %v5890_v11, %v2156_v57  ;;  %v2160_v22 = vadd.f32 %v5856_v48, %v7061_v53 }
 0x177   : > { %v2690_v1 = vpop.f32.mrf.mxu0  ;;  %v2065_v32 = vpop.f32.mrf.mxu1 }
 0x178   : > { %v7194_v21 = vadd.f32 %v2690_v1, %v2154_v42  ;;  %v2158_v24 = vadd.f32 %v2065_v32, %v7072_v59 }
 0x179   : > { %v5893_v20 = vpop.f32.mrf.mxu0  ;;  %v5859_v49 = vpop.f32.mrf.mxu1 }
 0x17a   : > { %v7197_v30 = vadd.f32 %v5893_v20, %v2159_v6  ;;  %v2163_v26 = vadd.f32 %v5859_v49, %v7077_v5 }
 0x17b   : > { %v2703_v7 = vpop.f32.mrf.mxu0  ;;  %v2078_v19 = vpop.f32.mrf.mxu1 }
 0x17c   : > { %v7200_v3 = vadd.f32 %v2703_v7, %v2157_v16  ;;  %v2161_v34 = vadd.f32 %v2078_v19, %v7084_v9 }
 0x17d   : > { %v5894_v53 = vpop.f32.mrf.mxu0  ;;  %v5860_v54 = vpop.f32.mrf.mxu1 }
 0x17e   : > { %v7204_v35 = vadd.f32 %v5894_v53, %v2160_v22  ;;  %v2164_v43 = vadd.f32 %v5860_v54, %v2128_v14 }
 0x17f   : > { %v2706_v59 = vpop.f32.mrf.mxu0  ;;  %v2081_v40 = vpop.f32.mrf.mxu1 }
 0x180   : > { %v7206_v37 = vadd.f32 %v2706_v59, %v2158_v24  ;;  %2200 = vst [vmem:[%s6695_s15 + $0x118] sm:$0x3f] %v2164_v43  ;;  %v2162_v5 = vadd.f32 %v2081_v40, %v7093_v52 }
 0x181   : > { %v5897_v10 = vpop.f32.mrf.mxu0  ;;  %v5903_v25 = vpop.f32.mrf.mxu1 }
 0x182   : > { %v7210_v57 = vadd.f32 %v5897_v10, %v2163_v26  ;;  %v3284_v9 = vadd.f32 %v5903_v25, %v7098_v8 }
 0x183   : > { %v2719_v38 = vpop.f32.mrf.mxu0  ;;  %v3103_v44 = vpop.f32.mrf.mxu1 }
 0x184   : > { %v7213_v42 = vadd.f32 %v2719_v38, %v2161_v34  ;;  %v3282_v61 = vadd.f32 %v3103_v44, %v7105_v15 }
 0x185   : > { %v5898_v6 = vpop.f32.mrf.mxu0  ;;  %v5904_v45 = vpop.f32.mrf.mxu1 }
 0x186   : > { %v3285_v41 = vadd.f32 %v5904_v45, %v7108_v39 }
 0x187   : > { %v2722_v16 = vpop.f32.mrf.mxu0  ;;  %v2769_v11 = vld [vmem:[%s6695_s15 + $0x118] sm:$0x3f]  ;;  %v3106_v48 = vpop.f32.mrf.mxu1 }
 0x188   : > { %v7218_v52 = vadd.f32 %v2722_v16, %v2162_v5  ;;  %v2805_v22 = vadd.f32 %v5898_v6, %v2769_v11  ;;  %v3283_v1 = vadd.f32 %v3106_v48, %v7115_v63 }
 0x189   : > { %v5941_v8 = vpop.f32.mrf.mxu0  ;;  %v5907_v32 = vpop.f32.mrf.mxu1 }
 0x18a   : > { %v7221_v24 = vadd.f32 %v5941_v8, %v3284_v9  ;;  %2841 = vst [vmem:[%s6695_s15 + $0x118] sm:$0x3f] %v2805_v22  ;;  %v3288_v20 = vadd.f32 %v5907_v32, %v7119_v62 }
 0x18b   : > { %v3614_v15 = vpop.f32.mrf.mxu0  ;;  %v3119_v49 = vpop.f32.mrf.mxu1 }
 0x18c   : > { %v7225_v26 = vadd.f32 %v3614_v15, %v3282_v61  ;;  %v3286_v39 = vadd.f32 %v3119_v49, %v7125_v17 }
 0x18d   : > { %v5942_v7 = vpop.f32.mrf.mxu0  ;;  %v5908_v19 = vpop.f32.mrf.mxu1 }
 0x18e   : > { %v7228_v34 = vadd.f32 %v5942_v7, %v3285_v41  ;;  %v3289_v53 = vadd.f32 %v5908_v19, %v7129_v2 }
 0x18f   : > { %v3617_v63 = vpop.f32.mrf.mxu0  ;;  %v3122_v54 = vpop.f32.mrf.mxu1 }
 0x190   : > { %v7231_v14 = vadd.f32 %v3617_v63, %v3283_v1  ;;  %v3287_v43 = vadd.f32 %v3122_v54, %v7133_v33 }
 0x191   : > { %v5945_v59 = vpop.f32.mrf.mxu0  ;;  %v5911_v62 = vpop.f32.mrf.mxu1 }
 0x192   : > { %v7234_v40 = vadd.f32 %v5945_v59, %v3288_v20  ;;  %v3292_v5 = vadd.f32 %v5911_v62, %v7137_v12 }
 0x193   : > { %v3630_v10 = vpop.f32.mrf.mxu0  ;;  %v3135_v17 = vpop.f32.mrf.mxu1 }
 0x194   : > { %v7237_v25 = vadd.f32 %v3630_v10, %v3286_v39  ;;  %v3290_v9 = vadd.f32 %v3135_v17, %v7140_v31 }
 0x195   : > { %v5946_v38 = vpop.f32.mrf.mxu0  ;;  %v5912_v2 = vpop.f32.mrf.mxu1 }
 0x196   : > { %v7240_v44 = vadd.f32 %v5946_v38, %v3289_v53  ;;  %v3293_v61 = vadd.f32 %v5912_v2, %v7143_v50 }
 0x197   : > { %v3633_v6 = vpop.f32.mrf.mxu0  ;;  %v3138_v33 = vpop.f32.mrf.mxu1 }
 0x198   : > { %v7243_v45 = vadd.f32 %v3633_v6, %v3287_v43  ;;  %v3291_v41 = vadd.f32 %v3138_v33, %v7146_v27 }
 0x199   : > { %v5949_v16 = vpop.f32.mrf.mxu0  ;;  %v5915_v12 = vpop.f32.mrf.mxu1 }
 0x19a   : > { %v7246_v11 = vadd.f32 %v5949_v16, %v3292_v5  ;;  %v3296_v48 = vadd.f32 %v5915_v12, %v7149_v28 }
 0x19b   : > { %v3646_v22 = vpop.f32.mrf.mxu0  ;;  %v3151_v31 = vpop.f32.mrf.mxu1 }
 0x19c   : > { %v7249_v1 = vadd.f32 %v3646_v22, %v3290_v9  ;;  %v3294_v8 = vadd.f32 %v3151_v31, %v7152_v56 }
 0x19d   : > { %v5950_v32 = vpop.f32.mrf.mxu0  ;;  %v5916_v50 = vpop.f32.mrf.mxu1 }
 0x19e   : > { %v7252_v20 = vadd.f32 %v5950_v32, %v3293_v61  ;;  %v3297_v15 = vadd.f32 %v5916_v50, %v7155_v23 }
 0x19f   : > { %v3649_v49 = vpop.f32.mrf.mxu0  ;;  %v3154_v27 = vpop.f32.mrf.mxu1 }
 0x1a0   : > { %v7255_v39 = vadd.f32 %v3649_v49, %v3291_v41  ;;  %v3295_v7 = vadd.f32 %v3154_v27, %v7158_v29 }
 0x1a1   : > { %v5953_v19 = vpop.f32.mrf.mxu0  ;;  %v5919_v28 = vpop.f32.mrf.mxu1 }
 0x1a2   : > { %v7258_v53 = vadd.f32 %v5953_v19, %v3296_v48  ;;  %v3300_v63 = vadd.f32 %v5919_v28, %v7161_v18 }
 0x1a3   : > { %v3662_v54 = vpop.f32.mrf.mxu0  ;;  %v3167_v56 = vpop.f32.mrf.mxu1 }
 0x1a4   : > { %v7261_v43 = vadd.f32 %v3662_v54, %v3294_v8  ;;  %v3298_v59 = vadd.f32 %v3167_v56, %v7164_v46 }
 0x1a5   : > { %v5954_v62 = vpop.f32.mrf.mxu0  ;;  %v5920_v23 = vpop.f32.mrf.mxu1 }
 0x1a6   : > { %v7264_v5 = vadd.f32 %v5954_v62, %v3297_v15  ;;  %v3301_v10 = vadd.f32 %v5920_v23, %v7167_v58 }
 0x1a7   : > { %v3665_v17 = vpop.f32.mrf.mxu0  ;;  %v3170_v29 = vpop.f32.mrf.mxu1 }
 0x1a8   : > { %v7267_v9 = vadd.f32 %v3665_v17, %v3295_v7  ;;  %v3299_v38 = vadd.f32 %v3170_v29, %v7170_v4 }
 0x1a9   : > { %v5957_v2 = vpop.f32.mrf.mxu0  ;;  %v5923_v18 = vpop.f32.mrf.mxu1 }
 0x1aa   : > { %v7270_v61 = vadd.f32 %v5957_v2, %v3300_v63  ;;  %v3304_v6 = vadd.f32 %v5923_v18, %v7173_v13 }
 0x1ab   : > { %v3678_v33 = vpop.f32.mrf.mxu0  ;;  %v3183_v46 = vpop.f32.mrf.mxu1 }
 0x1ac   : > { %v7273_v41 = vadd.f32 %v3678_v33, %v3298_v59  ;;  %v3302_v16 = vadd.f32 %v3183_v46, %v7176_v60 }
 0x1ad   : > { %v5958_v12 = vpop.f32.mrf.mxu0  ;;  %v5924_v58 = vpop.f32.mrf.mxu1 }
 0x1ae   : > { %v7276_v48 = vadd.f32 %v5958_v12, %v3301_v10  ;;  %v3305_v22 = vadd.f32 %v5924_v58, %v7179_v47 }
 0x1af   : > { %v3681_v31 = vpop.f32.mrf.mxu0  ;;  %v3186_v4 = vpop.f32.mrf.mxu1 }
 0x1b0   : > { %v7279_v8 = vadd.f32 %v3681_v31, %v3299_v38  ;;  %v3303_v32 = vadd.f32 %v3186_v4, %v7182_v55 }
 0x1b1   : > { %v5961_v50 = vpop.f32.mrf.mxu0  ;;  %v5927_v13 = vpop.f32.mrf.mxu1 }
 0x1b2   : > { %v7282_v15 = vadd.f32 %v5961_v50, %v3304_v6  ;;  %v3308_v49 = vadd.f32 %v5927_v13, %v7185_v51 }
 0x1b3   : > { %v3694_v27 = vpop.f32.mrf.mxu0  ;;  %v3199_v60 = vpop.f32.mrf.mxu1 }
 0x1b4   : > { %v7285_v7 = vadd.f32 %v3694_v27, %v3302_v16  ;;  %v3306_v19 = vadd.f32 %v3199_v60, %v7188_v0 }
 0x1b5   : > { %v5962_v28 = vpop.f32.mrf.mxu0  ;;  %v5928_v47 = vpop.f32.mrf.mxu1 }
 0x1b6   : > { %v7288_v63 = vadd.f32 %v5962_v28, %v3305_v22  ;;  %v3309_v54 = vadd.f32 %v5928_v47, %v7191_v36 }
 0x1b7   : > { %v3697_v56 = vpop.f32.mrf.mxu0  ;;  %v3202_v55 = vpop.f32.mrf.mxu1 }
 0x1b8   : > { %v7291_v59 = vadd.f32 %v3697_v56, %v3303_v32  ;;  %v3307_v62 = vadd.f32 %v3202_v55, %v7194_v21 }
 0x1b9   : > { %v5965_v23 = vpop.f32.mrf.mxu0  ;;  %v5931_v51 = vpop.f32.mrf.mxu1 }
 0x1ba   : > { %v7294_v10 = vadd.f32 %v5965_v23, %v3308_v49  ;;  %v3312_v17 = vadd.f32 %v5931_v51, %v7197_v30  ;;  %v3281_v49 = vld [vmem:[%s6695_s15 + $0x118] sm:$0x3f] }
 0x1bb   : > { %v3710_v29 = vpop.f32.mrf.mxu0  ;;  %v3215_v0 = vpop.f32.mrf.mxu1 }
 0x1bc   : > { %v7297_v38 = vadd.f32 %v3710_v29, %v3306_v19  ;;  %v3310_v2 = vadd.f32 %v3215_v0, %v7200_v3 }
 0x1bd   : > { %v5966_v18 = vpop.f32.mrf.mxu0  ;;  %v5932_v36 = vpop.f32.mrf.mxu1 }
 0x1be   : > { %v7300_v6 = vadd.f32 %v5966_v18, %v3309_v54  ;;  %v3313_v33 = vadd.f32 %v5932_v36, %v7204_v35 }
 0x1bf   : > { %v3713_v21 = vpop.f32.mrf.mxu0  ;;  %v3218_v46 = vpop.f32.mrf.mxu1 }
 0x1c0   : > { %v7303_v16 = vadd.f32 %v3713_v21, %v3307_v62  ;;  %v3311_v12 = vadd.f32 %v3218_v46, %v7206_v37 }
 0x1c1   : > { %v5969_v30 = vpop.f32.mrf.mxu0  ;;  %v5935_v58 = vpop.f32.mrf.mxu1 }
 0x1c2   : > { %v7306_v22 = vadd.f32 %v5969_v30, %v3312_v17  ;;  %v3316_v3 = vadd.f32 %v5935_v58, %v7210_v57 }
 0x1c3   : > { %v3726_v31 = vpop.f32.mrf.mxu0  ;;  %v3231_v4 = vpop.f32.mrf.mxu1 }
 0x1c4   : > { %v7309_v32 = vadd.f32 %v3726_v31, %v3310_v2  ;;  %v3314_v50 = vadd.f32 %v3231_v4, %v7213_v42 }
 0x1c5   : > { %v5970_v35 = vpop.f32.mrf.mxu0  ;;  %v5936_v13 = vpop.f32.mrf.mxu1 }
 0x1c6   : > { %v7313_v27 = vadd.f32 %v5970_v35, %v3313_v33  ;;  %v3317_v60 = vadd.f32 %v5936_v13, %v3281_v49  ;;  %v7330_v33 = vld [vmem:[%s7447_s2 + $0x1] ss:$0 sm:$0xff] }
 0x1c7   : > { %v3729_v37 = vpop.f32.mrf.mxu0  ;;  %v3234_v19 = vpop.f32.mrf.mxu1 }
 0x1c8   : > { %v7315_v28 = vadd.f32 %v3729_v37, %v3311_v12  ;;  %3353 = vst [vmem:[%s6695_s15 + $0x118] sm:$0x3f] %v3317_v60  ;;  %v3315_v57 = vadd.f32 %v3234_v19, %v7218_v52 }
 0x1c9   : > { %v5973_v47 = vpop.f32.mrf.mxu0  ;;  %v5979_v56 = vpop.f32.mrf.mxu1 }
 0x1ca   : > { %v7319_v54 = vadd.f32 %v5973_v47, %v3316_v3  ;;  %v4440_v29 = vadd.f32 %v5979_v56, %v7221_v24 }
 0x1cb   : > { %v3742_v55 = vpop.f32.mrf.mxu0  ;;  %v4259_v62 = vpop.f32.mrf.mxu1 }
 0x1cc   : > { %v7321_v42 = vadd.f32 %v3742_v55, %v3314_v50  ;;  %v4438_v21 = vadd.f32 %v4259_v62, %v7225_v26 }
 0x1cd   : > { %v5974_v23 = vpop.f32.mrf.mxu0  ;;  %v5980_v51 = vpop.f32.mrf.mxu1 }
 0x1ce   : > { %v4441_v24 = vadd.f32 %v5980_v51, %v7228_v34 }
 0x1cf   : > { %v3745_v17 = vpop.f32.mrf.mxu0  ;;  %v3792_v0 = vld [vmem:[%s6695_s15 + $0x118] sm:$0x3f]  ;;  %v4262_v18 = vpop.f32.mrf.mxu1 }
 0x1d0   : > { %v7325_v2 = vadd.f32 %v3745_v17, %v3315_v57  ;;  %v3828_v36 = vadd.f32 %v5974_v23, %v3792_v0  ;;  %v4439_v4 = vadd.f32 %v4262_v18, %v7231_v14 }
 0x1d1   : > { %v6017_v52 = vpop.f32.mrf.mxu0  ;;  %v5983_v46 = vpop.f32.mrf.mxu1 }
 0x1d2   : > { %v4952_v12 = vadd.f32 %v6017_v52, %v4440_v29  ;;  %3864 = vst [vmem:[%s6695_s15 + $0x118] sm:$0x3f] %v3828_v36  ;;  %v4444_v60 = vadd.f32 %v5983_v46, %v7234_v40 }
 0x1d3   : > { %v4771_v30 = vpop.f32.mrf.mxu0  ;;  %v4275_v3 = vpop.f32.mrf.mxu1 }
 0x1d4   : > { %vm4988_vm8 = vcmp.gt.f32.partialorder %v4952_v12, 0.0  ;;  %v5029_v58 = vmul.f32 %v7330_v33, %v4952_v12  ;;  %v4950_v31 = vadd.f32 %v4771_v30, %v4438_v21  ;;  %v4442_v14 = vadd.f32 %v4275_v3, %v7237_v25 }
 0x1d5   : > { %v6018_v50 = vpop.f32.mrf.mxu0  ;;  %v5984_v13 = vpop.f32.mrf.mxu1 }
 0x1d6   : > { %v5065_v35 = vsel %vm4988_vm8, %v4952_v12, %v5029_v58  ;;  %vm4986_vm9 = vcmp.gt.f32.partialorder %v4950_v31, 0.0  ;;  %v5027_v26 = vmul.f32 %v7330_v33, %v4950_v31  ;;  %v4953_v49 = vadd.f32 %v6018_v50, %v4441_v24 }
 0x1d7   : > { %5101 = vst [vmem:[%s6695_s15 + $0x10] sm:$0xff] %v5065_v35  ;;  %v4774_v34 = vpop.f32.mrf.mxu0  ;;  %v4278_v57 = vpop.f32.mrf.mxu1  ;;  %v4445_v51 = vadd.f32 %v5984_v13, %v7240_v44 }
 0x1d8   : > { %v5063_v37 = vsel %vm4986_vm9, %v4950_v31, %v5027_v26  ;;  %vm4989_vm10 = vcmp.gt.f32.partialorder %v4953_v49, 0.0  ;;  %v5030_v19 = vmul.f32 %v7330_v33, %v4953_v49  ;;  %v4951_v47 = vadd.f32 %v4774_v34, %v4439_v4 }
 0x1d9   : > { %5099 = vst [vmem:[%s6695_s15] sm:$0xff] %v5063_v37  ;;  %v6021_v56 = vpop.f32.mrf.mxu0  ;;  %v5987_v23 = vpop.f32.mrf.mxu1  ;;  %v4443_v36 = vadd.f32 %v4278_v57, %v7243_v45 }
 0x1da   : > { %v5066_v55 = vsel %vm4989_vm10, %v4953_v49, %v5030_v19  ;;  %vm4987_vm11 = vcmp.gt.f32.partialorder %v4951_v47, 0.0  ;;  %v5028_v62 = vmul.f32 %v7330_v33, %v4951_v47  ;;  %v4956_v40 = vadd.f32 %v6021_v56, %v4444_v60 }
 0x1db   : > { %5102 = vst [vmem:[%s6695_s15 + $0x18] sm:$0xff] %v5066_v55  ;;  %v4787_v17 = vpop.f32.mrf.mxu0  ;;  %v4291_v18 = vpop.f32.mrf.mxu1  ;;  %v4448_v30 = vadd.f32 %v5987_v23, %v7246_v11 }
 0x1dc   : > { %v5064_v29 = vsel %vm4987_vm11, %v4951_v47, %v5028_v62  ;;  %vm4992_vm12 = vcmp.gt.f32.partialorder %v4956_v40, 0.0  ;;  %v5033_v0 = vmul.f32 %v7330_v33, %v4956_v40  ;;  %v4954_v25 = vadd.f32 %v4787_v17, %v4442_v14 }
 0x1dd   : > { %5100 = vst [vmem:[%s6695_s15 + $0x8] sm:$0xff] %v5064_v29  ;;  %v6022_v52 = vpop.f32.mrf.mxu0  ;;  %v5988_v12 = vpop.f32.mrf.mxu1  ;;  %v4446_v4 = vadd.f32 %v4291_v18, %v7249_v1 }
 0x1de   : > { %v5069_v21 = vsel %vm4992_vm12, %v4956_v40, %v5033_v0  ;;  %vm4990_vm13 = vcmp.gt.f32.partialorder %v4954_v25, 0.0  ;;  %v5031_v46 = vmul.f32 %v7330_v33, %v4954_v25  ;;  %v4957_v44 = vadd.f32 %v6022_v52, %v4445_v51 }
 0x1df   : > { %5105 = vst [vmem:[%s6695_s15 + $0x30] sm:$0xff] %v5069_v21  ;;  %v4790_v24 = vpop.f32.mrf.mxu0  ;;  %v4294_v31 = vpop.f32.mrf.mxu1  ;;  %v4449_v49 = vadd.f32 %v5988_v12, %v7252_v20 }
 0x1e0   : > { %v5067_v58 = vsel %vm4990_vm13, %v4954_v25, %v5031_v46  ;;  %vm4993_vm14 = vcmp.gt.f32.partialorder %v4957_v44, 0.0  ;;  %v5034_v3 = vmul.f32 %v7330_v33, %v4957_v44  ;;  %v4955_v45 = vadd.f32 %v4790_v24, %v4443_v36 }
 0x1e1   : > { %5103 = vst [vmem:[%s6695_s15 + $0x20] sm:$0xff] %v5067_v58  ;;  %v6025_v50 = vpop.f32.mrf.mxu0  ;;  %v5991_v13 = vpop.f32.mrf.mxu1  ;;  %v4447_v57 = vadd.f32 %v4294_v31, %v7255_v39 }
 0x1e2   : > { %v5070_v35 = vsel %vm4993_vm14, %v4957_v44, %v5034_v3  ;;  %vm4991_vm15 = vcmp.gt.f32.partialorder %v4955_v45, 0.0  ;;  %v5032_v26 = vmul.f32 %v7330_v33, %v4955_v45  ;;  %v4960_v11 = vadd.f32 %v6025_v50, %v4448_v30 }
 0x1e3   : > { %5106 = vst [vmem:[%s6695_s15 + $0x38] sm:$0xff] %v5070_v35  ;;  %v4803_v60 = vpop.f32.mrf.mxu0  ;;  %v4307_v19 = vpop.f32.mrf.mxu1  ;;  %v4452_v62 = vadd.f32 %v5991_v13, %v7258_v53 }
 0x1e4   : > { %v5068_v34 = vsel %vm4991_vm15, %v4955_v45, %v5032_v26  ;;  %vm4996_vm0 = vcmp.gt.f32.partialorder %v4960_v11, 0.0  ;;  %v5037_v37 = vmul.f32 %v7330_v33, %v4960_v11  ;;  %v4958_v1 = vadd.f32 %v4803_v60, %v4446_v4 }
 0x1e5   : > { %5104 = vst [vmem:[%s6695_s15 + $0x28] sm:$0xff] %v5068_v34  ;;  %v6026_v47 = vpop.f32.mrf.mxu0  ;;  %v5992_v55 = vpop.f32.mrf.mxu1  ;;  %v4450_v29 = vadd.f32 %v4307_v19, %v7261_v43 }
 0x1e6   : > { %v5073_v14 = vsel %vm4996_vm0, %v4960_v11, %v5037_v37  ;;  %vm4994_vm1 = vcmp.gt.f32.partialorder %v4958_v1, 0.0  ;;  %v5035_v56 = vmul.f32 %v7330_v33, %v4958_v1  ;;  %v4961_v20 = vadd.f32 %v6026_v47, %v4449_v49 }
 0x1e7   : > { %5109 = vst [vmem:[%s6695_s15 + $0x50] sm:$0xff] %v5073_v14  ;;  %v4806_v23 = vpop.f32.mrf.mxu0  ;;  %v4310_v17 = vpop.f32.mrf.mxu1  ;;  %v4453_v52 = vadd.f32 %v5992_v55, %v7264_v5 }
 0x1e8   : > { %v5071_v40 = vsel %vm4994_vm1, %v4958_v1, %v5035_v56  ;;  %vm4997_vm2 = vcmp.gt.f32.partialorder %v4961_v20, 0.0  ;;  %v5038_v51 = vmul.f32 %v7330_v33, %v4961_v20  ;;  %v4959_v39 = vadd.f32 %v4806_v23, %v4447_v57 }
 0x1e9   : > { %5107 = vst [vmem:[%s6695_s15 + $0x40] sm:$0xff] %v5071_v40  ;;  %v6029_v0 = vpop.f32.mrf.mxu0  ;;  %v5995_v36 = vpop.f32.mrf.mxu1  ;;  %v4451_v30 = vadd.f32 %v4310_v17, %v7267_v9 }
 0x1ea   : > { %v5074_v18 = vsel %vm4997_vm2, %v4961_v20, %v5038_v51  ;;  %vm4995_vm3 = vcmp.gt.f32.partialorder %v4959_v39, 0.0  ;;  %v5036_v25 = vmul.f32 %v7330_v33, %v4959_v39  ;;  %v4964_v53 = vadd.f32 %v6029_v0, %v4452_v62 }
 0x1eb   : > { %5110 = vst [vmem:[%s6695_s15 + $0x58] sm:$0xff] %v5074_v18  ;;  %v4819_v21 = vpop.f32.mrf.mxu0  ;;  %v4323_v44 = vpop.f32.mrf.mxu1  ;;  %v4456_v45 = vadd.f32 %v5995_v36, %v7270_v61 }
 0x1ec   : > { %v5072_v46 = vsel %vm4995_vm3, %v4959_v39, %v5036_v25  ;;  %vm5000_vm4 = vcmp.gt.f32.partialorder %v4964_v53, 0.0  ;;  %v5041_v12 = vmul.f32 %v7330_v33, %v4964_v53  ;;  %v4962_v43 = vadd.f32 %v4819_v21, %v4450_v29 }
 0x1ed   : > { %5108 = vst [vmem:[%s6695_s15 + $0x48] sm:$0xff] %v5072_v46  ;;  %v6030_v24 = vpop.f32.mrf.mxu0  ;;  %v5996_v31 = vpop.f32.mrf.mxu1  ;;  %v4454_v13 = vadd.f32 %v4323_v44, %v7273_v41 }
 0x1ee   : > { %v5077_v58 = vsel %vm5000_vm4, %v4964_v53, %v5041_v12  ;;  %vm4998_vm5 = vcmp.gt.f32.partialorder %v4962_v43, 0.0  ;;  %v5039_v3 = vmul.f32 %v7330_v33, %v4962_v43  ;;  %v4965_v5 = vadd.f32 %v6030_v24, %v4453_v52 }
 0x1ef   : > { %5113 = vst [vmem:[%s6695_s15 + $0x70] sm:$0xff] %v5077_v58  ;;  %v4822_v4 = vpop.f32.mrf.mxu0  ;;  %v4326_v26 = vpop.f32.mrf.mxu1  ;;  %v4457_v37 = vadd.f32 %v5996_v31, %v7276_v48 }
 0x1f0   : > { %v5075_v50 = vsel %vm4998_vm5, %v4962_v43, %v5039_v3  ;;  %vm5001_vm6 = vcmp.gt.f32.partialorder %v4965_v5, 0.0  ;;  %v5042_v35 = vmul.f32 %v7330_v33, %v4965_v5  ;;  %v4963_v9 = vadd.f32 %v4822_v4, %v4451_v30 }
 0x1f1   : > { %5111 = vst [vmem:[%s6695_s15 + $0x60] sm:$0xff] %v5075_v50  ;;  %v6033_v11 = vpop.f32.mrf.mxu0  ;;  %v5999_v34 = vpop.f32.mrf.mxu1  ;;  %v4455_v14 = vadd.f32 %v4326_v26, %v7279_v8 }
 0x1f2   : > { %v5078_v49 = vsel %vm5001_vm6, %v4965_v5, %v5042_v35  ;;  %vm4999_vm7 = vcmp.gt.f32.partialorder %v4963_v9, 0.0  ;;  %v5040_v60 = vmul.f32 %v7330_v33, %v4963_v9  ;;  %v4968_v61 = vadd.f32 %v6033_v11, %v4456_v45 }
 0x1f3   : > { %5114 = vst [vmem:[%s6695_s15 + $0x78] sm:$0xff] %v5078_v49  ;;  %v4835_v19 = vpop.f32.mrf.mxu0  ;;  %v4339_v47 = vpop.f32.mrf.mxu1  ;;  %v4460_v23 = vadd.f32 %v5999_v34, %v7282_v15 }
 0x1f4   : > { %v5076_v1 = vsel %vm4999_vm7, %v4963_v9, %v5040_v60  ;;  %vm5004_vm8 = vcmp.gt.f32.partialorder %v4968_v61, 0.0  ;;  %v5045_v57 = vmul.f32 %v7330_v33, %v4968_v61  ;;  %v4966_v41 = vadd.f32 %v4835_v19, %v4454_v13 }
 0x1f5   : > { %5112 = vst [vmem:[%s6695_s15 + $0x68] sm:$0xff] %v5076_v1  ;;  %v6034_v56 = vpop.f32.mrf.mxu0  ;;  %v6000_v62 = vpop.f32.mrf.mxu1  ;;  %v4458_v29 = vadd.f32 %v4339_v47, %v7285_v7 }
 0x1f6   : > { %v5081_v55 = vsel %vm5004_vm8, %v4968_v61, %v5045_v57  ;;  %vm5002_vm9 = vcmp.gt.f32.partialorder %v4966_v41, 0.0  ;;  %v5043_v20 = vmul.f32 %v7330_v33, %v4966_v41  ;;  %v4969_v48 = vadd.f32 %v6034_v56, %v4457_v37 }
 0x1f7   : > { %5117 = vst [vmem:[%s6695_s15 + $0x90] sm:$0xff] %v5081_v55  ;;  %v4838_v40 = vpop.f32.mrf.mxu0  ;;  %v4342_v39 = vpop.f32.mrf.mxu1  ;;  %v4461_v53 = vadd.f32 %v6000_v62, %v7288_v63 }
 0x1f8   : > { %v5079_v51 = vsel %vm5002_vm9, %v4966_v41, %v5043_v20  ;;  %vm5005_vm10 = vcmp.gt.f32.partialorder %v4969_v48, 0.0  ;;  %v5046_v17 = vmul.f32 %v7330_v33, %v4969_v48  ;;  %v4967_v8 = vadd.f32 %v4838_v40, %v4455_v14 }
 0x1f9   : > { %5115 = vst [vmem:[%s6695_s15 + $0x80] sm:$0xff] %v5079_v51  ;;  %v6037_v0 = vpop.f32.mrf.mxu0  ;;  %v6003_v36 = vpop.f32.mrf.mxu1  ;;  %v4459_v44 = vadd.f32 %v4342_v39, %v7291_v59 }
 0x1fa   : > { %v5082_v18 = vsel %vm5005_vm10, %v4969_v48, %v5046_v17  ;;  %vm5003_vm11 = vcmp.gt.f32.partialorder %v4967_v8, 0.0  ;;  %v5044_v25 = vmul.f32 %v7330_v33, %v4967_v8  ;;  %v4972_v15 = vadd.f32 %v6037_v0, %v4460_v23 }
 0x1fb   : > { %5118 = vst [vmem:[%s6695_s15 + $0x98] sm:$0xff] %v5082_v18  ;;  %v4851_v52 = vpop.f32.mrf.mxu0  ;;  %v4355_v12 = vpop.f32.mrf.mxu1  ;;  %v4464_v3 = vadd.f32 %v6003_v36, %v7294_v10 }
 0x1fc   : > { %v5080_v21 = vsel %vm5003_vm11, %v4967_v8, %v5044_v25  ;;  %vm5008_vm12 = vcmp.gt.f32.partialorder %v4972_v15, 0.0  ;;  %v5049_v46 = vmul.f32 %v7330_v33, %v4972_v15  ;;  %v4970_v7 = vadd.f32 %v4851_v52, %v4458_v29 }
 0x1fd   : > { %5116 = vst [vmem:[%s6695_s15 + $0x88] sm:$0xff] %v5080_v21  ;;  %v6038_v43 = vpop.f32.mrf.mxu0  ;;  %v6004_v58 = vpop.f32.mrf.mxu1  ;;  %v4462_v50 = vadd.f32 %v4355_v12, %v7297_v38 }
 0x1fe   : > { %v5085_v30 = vsel %vm5008_vm12, %v4972_v15, %v5049_v46  ;;  %vm5006_vm13 = vcmp.gt.f32.partialorder %v4970_v7, 0.0  ;;  %v5047_v24 = vmul.f32 %v7330_v33, %v4970_v7  ;;  %v4973_v63 = vadd.f32 %v6038_v43, %v4461_v53  ;;  %v4437_v53 = vld [vmem:[%s6695_s15 + $0x118] sm:$0x3f] }
 0x1ff   : > { %5121 = vst [vmem:[%s6695_s15 + $0xb0] sm:$0xff] %v5085_v30  ;;  %v4854_v31 = vpop.f32.mrf.mxu0  ;;  %v4358_v4 = vpop.f32.mrf.mxu1  ;;  %v4465_v11 = vadd.f32 %v6004_v58, %v7300_v6 }
 0x200   : > { %v5083_v5 = vsel %vm5006_vm13, %v4970_v7, %v5047_v24  ;;  %vm5009_vm14 = vcmp.gt.f32.partialorder %v4973_v63, 0.0  ;;  %v5050_v45 = vmul.f32 %v7330_v33, %v4973_v63  ;;  %v4971_v59 = vadd.f32 %v4854_v31, %v4459_v44 }
 0x201   : > { %5119 = vst [vmem:[%s6695_s15 + $0xa0] sm:$0xff] %v5083_v5  ;;  %v6041_v35 = vpop.f32.mrf.mxu0  ;;  %v6007_v13 = vpop.f32.mrf.mxu1  ;;  %v4463_v37 = vadd.f32 %v4358_v4, %v7303_v16 }
 0x202   : > { %v5086_v26 = vsel %vm5009_vm14, %v4973_v63, %v5050_v45  ;;  %vm5007_vm15 = vcmp.gt.f32.partialorder %v4971_v59, 0.0  ;;  %v5048_v9 = vmul.f32 %v7330_v33, %v4971_v59  ;;  %v4976_v10 = vadd.f32 %v6041_v35, %v4464_v3 }
 0x203   : > { %5122 = vst [vmem:[%s6695_s15 + $0xb8] sm:$0xff] %v5086_v26  ;;  %v4867_v49 = vpop.f32.mrf.mxu0  ;;  %v4371_v61 = vpop.f32.mrf.mxu1  ;;  %v4468_v41 = vadd.f32 %v6007_v13, %v7306_v22 }
 0x204   : > { %v5084_v60 = vsel %vm5007_vm15, %v4971_v59, %v5048_v9  ;;  %vm5012_vm0 = vcmp.gt.f32.partialorder %v4976_v10, 0.0  ;;  %v5053_v34 = vmul.f32 %v7330_v33, %v4976_v10  ;;  %v4974_v38 = vadd.f32 %v4867_v49, %v4462_v50 }
 0x205   : > { %5120 = vst [vmem:[%s6695_s15 + $0xa8] sm:$0xff] %v5084_v60  ;;  %v6042_v19 = vpop.f32.mrf.mxu0  ;;  %v6008_v47 = vpop.f32.mrf.mxu1  ;;  %v4466_v62 = vadd.f32 %v4371_v61, %v7309_v32 }
 0x206   : > { %v5089_v1 = vsel %vm5012_vm0, %v4976_v10, %v5053_v34  ;;  %vm5010_vm1 = vcmp.gt.f32.partialorder %v4974_v38, 0.0  ;;  %v5051_v57 = vmul.f32 %v7330_v33, %v4974_v38  ;;  %v4977_v6 = vadd.f32 %v6042_v19, %v4465_v11 }
 0x207   : > { %5125 = vst [vmem:[%s6695_s15 + $0xd0] sm:$0xff] %v5089_v1  ;;  %v4870_v14 = vpop.f32.mrf.mxu0  ;;  %v4374_v20 = vpop.f32.mrf.mxu1  ;;  %v4469_v17 = vadd.f32 %v6008_v47, %v7313_v27 }
 0x208   : > { %v5087_v56 = vsel %vm5010_vm1, %v4974_v38, %v5051_v57  ;;  %vm5013_vm2 = vcmp.gt.f32.partialorder %v4977_v6, 0.0  ;;  %v5054_v55 = vmul.f32 %v7330_v33, %v4977_v6  ;;  %v4975_v16 = vadd.f32 %v4870_v14, %v4463_v37 }
 0x209   : > { %5123 = vst [vmem:[%s6695_s15 + $0xc0] sm:$0xff] %v5087_v56  ;;  %v6045_v48 = vpop.f32.mrf.mxu0  ;;  %v6011_v51 = vpop.f32.mrf.mxu1  ;;  %v4467_v18 = vadd.f32 %v4374_v20, %v7315_v28 }
 0x20a   : > { %v5090_v23 = vsel %vm5013_vm2, %v4977_v6, %v5054_v55  ;;  %vm5011_vm3 = vcmp.gt.f32.partialorder %v4975_v16, 0.0  ;;  %v5052_v40 = vmul.f32 %v7330_v33, %v4975_v16  ;;  %v4980_v22 = vadd.f32 %v6045_v48, %v4468_v41 }
 0x20b   : > { %5126 = vst [vmem:[%s6695_s15 + $0xd8] sm:$0xff] %v5090_v23  ;;  %v4883_v39 = vpop.f32.mrf.mxu0  ;;  %v4387_v32 = vpop.f32.mrf.mxu1  ;;  %v4472_v21 = vadd.f32 %v6011_v51, %v7319_v54 }
 0x20c   : > { %v5088_v8 = vsel %vm5011_vm3, %v4975_v16, %v5052_v40  ;;  %vm5016_vm4 = vcmp.gt.f32.partialorder %v4980_v22, 0.0  ;;  %v5057_v29 = vmul.f32 %v7330_v33, %v4980_v22  ;;  %v4978_v0 = vadd.f32 %v4883_v39, %v4466_v62 }
 0x20d   : > { %5124 = vst [vmem:[%s6695_s15 + $0xc8] sm:$0xff] %v5088_v8  ;;  %v6046_v25 = vpop.f32.mrf.mxu0  ;;  %v6012_v27 = vpop.f32.mrf.mxu1  ;;  %v4470_v43 = vadd.f32 %v4387_v32, %v7321_v42 }
 0x20e   : > { %v5093_v36 = vsel %vm5016_vm4, %v4980_v22, %v5057_v29  ;;  %vm5014_vm5 = vcmp.gt.f32.partialorder %v4978_v0, 0.0  ;;  %v5055_v15 = vmul.f32 %v7330_v33, %v4978_v0  ;;  %v4981_v52 = vadd.f32 %v6046_v25, %v4469_v17 }
 0x20f   : > { %5129 = vst [vmem:[%s6695_s15 + $0xf0] sm:$0xff] %v5093_v36  ;;  %v4473_v46 = vadd.f32 %v6012_v27, %v4437_v53  ;;  %v4886_v12 = vpop.f32.mrf.mxu0  ;;  %v4390_v63 = vpop.f32.mrf.mxu1 }
 0x210   : > { %v5091_v7 = vsel %vm5014_vm5, %v4978_v0, %v5055_v15  ;;  %vm5017_vm6 = vcmp.gt.f32.partialorder %v4981_v52, 0.0  ;;  %v5058_v28 = vmul.f32 %v7330_v33, %v4981_v52  ;;  %v4979_v44 = vadd.f32 %v4886_v12, %v4467_v18 }
 0x211   : > { %5127 = vst [vmem:[%s6695_s15 + $0xe0] sm:$0xff] %v5091_v7  ;;  %4509 = vst [vmem:[%s6695_s15 + $0x118] sm:$0x3f] %v4473_v46  ;;  %v6049_v30 = vpop.f32.mrf.mxu0  ;;  %v4471_v4 = vadd.f32 %v4390_v63, %v7325_v2 }
 0x212   : > { %v5094_v24 = vsel %vm5017_vm6, %v4981_v52, %v5058_v28  ;;  %vm5015_vm7 = vcmp.gt.f32.partialorder %v4979_v44, 0.0  ;;  %v5056_v54 = vmul.f32 %v7330_v33, %v4979_v44  ;;  %v4984_v58 = vadd.f32 %v6049_v30, %v4472_v21 }
 0x213   : > { %5130 = vst [vmem:[%s6695_s15 + $0xf8] sm:$0xff] %v5094_v24  ;;  %v4899_v3 = vpop.f32.mrf.mxu0 }
 0x214   : > { %v5092_v31 = vsel %vm5015_vm7, %v4979_v44, %v5056_v54  ;;  %vm5020_vm8 = vcmp.gt.f32.partialorder %v4984_v58, 0.0  ;;  %v5061_v5 = vmul.f32 %v7330_v33, %v4984_v58  ;;  %v4982_v45 = vadd.f32 %v4899_v3, %v4470_v43 }
 0x215   : > { %5128 = vst [vmem:[%s6695_s15 + $0xe8] sm:$0xff] %v5092_v31  ;;  %v6050_v42 = vpop.f32.mrf.mxu0 }
 0x216   : > { %v5097_v59 = vsel %vm5020_vm8, %v4984_v58, %v5061_v5  ;;  %vm5018_vm9 = vcmp.gt.f32.partialorder %v4982_v45, 0.0  ;;  %v5059_v50 = vmul.f32 %v7330_v33, %v4982_v45 }
 0x217   : > { %5133 = vst [vmem:[%s6695_s15 + $0x110] sm:$0xff] %v5097_v59  ;;  %v4902_v35 = vpop.f32.mrf.mxu0 }
 0x218   : > { %v5095_v26 = vsel %vm5018_vm9, %v4982_v45, %v5059_v50  ;;  %v4949_v9 = vld [vmem:[%s6695_s15 + $0x118] sm:$0x3f]  ;;  %v4983_v13 = vadd.f32 %v4902_v35, %v4471_v4 }
 0x219   : > { %5131 = vst [vmem:[%s6695_s15 + $0x100] sm:$0xff] %v5095_v26  ;;  %v4985_v10 = vadd.f32 %v6050_v42, %v4949_v9 }
 0x21a   : > { %vm5019_vm10 = vcmp.gt.f32.partialorder %v4983_v13, 0.0  ;;  %v5060_v11 = vmul.f32 %v7330_v33, %v4983_v13 }
 0x21b   : > { %vm5021_vm11 = vcmp.gt.f32.partialorder %v4985_v10, 0.0  ;;  %v5062_v49 = vmul.f32 %v7330_v33, %v4985_v10 }
 0x21c   : > { %v5096_v2 = vsel %vm5019_vm10, %v4983_v13, %v5060_v11 }
 0x21d   : > { %v5098_v60 = vsel %vm5021_vm11, %v4985_v10, %v5062_v49  ;;  %5132 = vst [vmem:[%s6695_s15 + $0x108] sm:$0xff] %v5096_v2 }
 0x21e   : > { %5134 = vst [vmem:[%s6695_s15 + $0x118] sm:$0x3f] %v5098_v60 }
 0x21f PF: > { %s13_s12 = sadd.s32 1, %s6246_s12  }
 0x220   : > { %p10_p4 = scmp.ge.s32.totalorder %s13_s12, 4  }
 0x222   :  { %12 = sbr.rel (!%p10_p4) target bundleno = 1 (0x1), region = 70 }

</bundles_post_ra>
